<compile_context>
chip_gen: v7x
topology: tpu7x:2x2x1
jax: 0.10.0
libtpu: 0.0.40
codegen_flags: <defaults>
</compile_context>

<pallas_src>
import math

import jax
import jax.numpy as jnp
import numpy as np
from jax.experimental import pallas as pl
from jax.experimental.pallas import tpu as pltpu

# ---- model hyper-parameters (small-scale version of the BERT encoder layer) ----
D_MODEL = 128          # d_model
N_HEADS = 4            # n_heads
D_K = D_V = 32         # d_k = d_v
D_FF = 256             # d_ff
BATCH = 2
SEQ = 8
LN_EPS = 1e-5
NEG_INF = -1.0e9

_SQRT_2_OVER_PI = math.sqrt(2.0 / math.pi)


def _gelu_tanh(x):
    # tanh-form GELU: the transcendental runs on the EUP slot, ~free next to VPU work.
    return 0.5 * x * (1.0 + jnp.tanh(_SQRT_2_OVER_PI * (x + 0.044715 * x * x * x)))


# --------------------------------------------------------------------------------
# Fused kernel (single invocation, whole batch):
#   QKV proj -> per-(batch,head) SDPA -> out proj -> residual+LN -> fc2(gelu(fc1)).
# --------------------------------------------------------------------------------
def encoder_layer_kernel(x_ref, bias_ref,
                         wqkv_ref, bqkv_ref, wo_ref, bo_ref,
                         ln_g_ref, ln_b_ref,
                         w1_ref, b1_ref, w2_ref, b2_ref,
                         out_ref, attn_ref):
    f32 = jnp.float32
    B, S, _ = bias_ref.shape
    H, dk, dv = N_HEADS, D_K, D_V
    Hdk = H * dk

    x = x_ref[...]                                               # (B*S, D) f32

    # ---- fused QKV projection: single (B*S,128)@(128,384) MXU matmul ----
    # (1/sqrt(dk) is already folded into the Q columns wrapper-side)
    wqkv = wqkv_ref[...].astype(f32)                             # bf16 -> f32 cast (VPU)
    qkv = jnp.dot(x, wqkv, preferred_element_type=f32) + bqkv_ref[...]   # (B*S, 3*H*dk)

    # ---- per-(batch, head) scaled dot-product attention (statically unrolled) ----
    ctx_rows = []
    for b in range(B):
        r0 = b * S
        bias_b = bias_ref[b]                                     # (S, S) additive bias
        attn_heads = []
        ctx_heads = []
        for h in range(H):
            q = qkv[r0:r0 + S, h * dk:(h + 1) * dk]                         # (S, dk)
            k = qkv[r0:r0 + S, Hdk + h * dk:Hdk + (h + 1) * dk]             # (S, dk)
            v = qkv[r0:r0 + S, 2 * Hdk + h * dv:2 * Hdk + (h + 1) * dv]     # (S, dv)
            s = jax.lax.dot_general(q, k, (((1,), (1,)), ((), ())),
                                    preferred_element_type=f32) + bias_b    # (S, S)
            m = jnp.max(s, axis=-1, keepdims=True)
            e = jnp.exp(s - m)
            a = e / jnp.sum(e, axis=-1, keepdims=True)                      # exact softmax
            attn_heads.append(a)
            ctx_heads.append(jnp.dot(a, v, preferred_element_type=f32))     # (S, dv)
        # lane-packed attention store: (S, H*S); wrapper untangles to (B,H,S,S)
        attn_ref[b] = jnp.concatenate(attn_heads, axis=-1)
        ctx_rows.append(jnp.concatenate(ctx_heads, axis=-1))                # (S, H*dv)

    ctx = jnp.concatenate(ctx_rows, axis=0)                      # (B*S, H*dv) = (16,128)

    # ---- output projection: single (B*S,128)@(128,128) matmul, K = 128 ----
    proj = jnp.dot(ctx, wo_ref[...].astype(f32),
                   preferred_element_type=f32) + bo_ref[...]     # (B*S, D)

    # ---- residual + LayerNorm(d_model) ----
    y = proj + x
    mean = jnp.mean(y, axis=-1, keepdims=True)
    var = jnp.mean((y - mean) ** 2, axis=-1, keepdims=True)
    yn = (y - mean) * jax.lax.rsqrt(var + LN_EPS)
    yn = yn * ln_g_ref[...] + ln_b_ref[...]

    # ---- position-wise FFN (fused, no HBM round trip) ----
    h1 = jnp.dot(yn, w1_ref[...].astype(f32), preferred_element_type=f32) + b1_ref[...]
    h1 = _gelu_tanh(h1)
    out = jnp.dot(h1, w2_ref[...].astype(f32), preferred_element_type=f32) + b2_ref[...]
    out_ref[...] = out


# --------------------------------------------------------------------------------
# Wrapper
# --------------------------------------------------------------------------------
@jax.jit
def encoder_layer(enc_inputs, enc_self_attn_mask, params):
    B, S, D = enc_inputs.shape
    H, dk, dv = N_HEADS, D_K, D_V

    x2d = enc_inputs.reshape(B * S, D)
    # additive mask bias, precomputed once (wrapper-side): -1e9 where masked, else 0
    bias = jnp.where(enc_self_attn_mask, NEG_INF, 0.0).astype(jnp.float32)   # (B,S,S)

    # one-time weight packing: [Wq/sqrt(dk) | Wk | Wv] -> (D, 3*H*dk); weights in bf16
    inv_scale = 1.0 / math.sqrt(dk)
    wqkv = jnp.concatenate([params["wq"] * inv_scale, params["wk"], params["wv"]],
                           axis=-1).astype(jnp.bfloat16)                     # (D, 3*H*dk)
    bqkv = jnp.concatenate([params["bq"] * inv_scale, params["bk"], params["bv"]],
                           axis=-1).astype(jnp.float32)                      # (1, 3*H*dk)
    wo = params["wo"].astype(jnp.bfloat16)                                   # (H*dv, D)
    w1 = params["w1"].astype(jnp.bfloat16)                                   # (D, D_FF)
    w2 = params["w2"].astype(jnp.bfloat16)                                   # (D_FF, D)

    def full(shape):
        return pl.BlockSpec(shape, lambda i: (0,) * len(shape))

    kernel = pl.pallas_call(
        encoder_layer_kernel,
        out_shape=(jax.ShapeDtypeStruct((B * S, D), jnp.float32),
                   jax.ShapeDtypeStruct((B, S, H * S), jnp.float32)),
        grid=(1,),                                    # single step: whole batch at once
        in_specs=[
            full((B * S, D)),                         # x (B*S, 128) lane-dense
            full((B, S, S)),                          # additive mask bias
            full((D, 3 * H * dk)), full((1, 3 * H * dk)),   # W_QKV (bf16), b_QKV
            full((H * dv, D)), full((1, D)),          # W_O (bf16), b_O
            full((1, D)), full((1, D)),               # LN gamma, beta
            full((D, D_FF)), full((1, D_FF)),         # fc1 (bf16), b1
            full((D_FF, D)), full((1, D)),            # fc2 (bf16), b2
        ],
        out_specs=(full((B * S, D)), full((B, S, H * S))),
        compiler_params=pltpu.CompilerParams(dimension_semantics=("arbitrary",)),
    )

    out2d, attn_wide = kernel(x2d, bias, wqkv, bqkv, wo, params["bo"],
                              params["ln_g"], params["ln_b"],
                              w1, params["b1"], w2, params["b2"])
    out = out2d.reshape(B, S, D)
    # untangle lane-packed attention (B, S, H*S) -> (B, H, S, S)  (layout plumbing only)
    attn = attn_wide.reshape(B, S, H, S).transpose(0, 2, 1, 3)
    return out, attn


# --------------------------------------------------------------------------------
# Pure-JAX reference (mirrors the PyTorch forward exactly)
# --------------------------------------------------------------------------------
def encoder_layer_ref(x, mask, p):
    B, S, D = x.shape
    hp = jax.lax.Precision.HIGHEST
    q = (x @ p["wq"] + p["bq"]).reshape(B, S, N_HEADS, D_K).transpose(0, 2, 1, 3)
    k = (x @ p["wk"] + p["bk"]).reshape(B, S, N_HEADS, D_K).transpose(0, 2, 1, 3)
    v = (x @ p["wv"] + p["bv"]).reshape(B, S, N_HEADS, D_V).transpose(0, 2, 1, 3)
    scores = jnp.einsum("bhqd,bhkd->bhqk", q, k, precision=hp) / np.sqrt(D_K)
    scores = jnp.where(mask[:, None, :, :], NEG_INF, scores)
    attn = jax.nn.softmax(scores, axis=-1)
    ctx = jnp.einsum("bhqk,bhkd->bhqd", attn, v, precision=hp)
    ctx = ctx.transpose(0, 2, 1, 3).reshape(B, S, N_HEADS * D_V)
    out = ctx @ p["wo"] + p["bo"] + x
    mean = out.mean(-1, keepdims=True)
    var = ((out - mean) ** 2).mean(-1, keepdims=True)
    out = (out - mean) / jnp.sqrt(var + LN_EPS) * p["ln_g"] + p["ln_b"]
    h = out @ p["w1"] + p["b1"]
    h = h * 0.5 * (1.0 + jax.scipy.special.erf(h / math.sqrt(2.0)))   # exact-erf GELU
    return h @ p["w2"] + p["b2"], attn


def init_params(key):
    ks = jax.random.split(key, 8)
    n = lambda k, shape: (jax.random.normal(k, shape, jnp.float32) * 0.02)
    return {
        "wq": n(ks[0], (D_MODEL, N_HEADS * D_K)), "bq": jnp.zeros((1, N_HEADS * D_K), jnp.float32),
        "wk": n(ks[1], (D_MODEL, N_HEADS * D_K)), "bk": jnp.zeros((1, N_HEADS * D_K), jnp.float32),
        "wv": n(ks[2], (D_MODEL, N_HEADS * D_V)), "bv": jnp.zeros((1, N_HEADS * D_V), jnp.float32),
        "wo": n(ks[3], (N_HEADS * D_V, D_MODEL)), "bo": jnp.zeros((1, D_MODEL), jnp.float32),
        "ln_g": jnp.ones((1, D_MODEL), jnp.float32), "ln_b": jnp.zeros((1, D_MODEL), jnp.float32),
        "w1": n(ks[4], (D_MODEL, D_FF)), "b1": jnp.zeros((1, D_FF), jnp.float32),
        "w2": n(ks[5], (D_FF, D_MODEL)), "b2": jnp.zeros((1, D_MODEL), jnp.float32),
    }


if __name__ == "__main__":
    key = jax.random.PRNGKey(0)
    k_x, k_p = jax.random.split(key)

    enc_inputs = jax.random.normal(k_x, (BATCH, SEQ, D_MODEL), jnp.float32)
    # padding-style self-attention mask: True (masked) for key positions >= valid length
    valid_lens = jnp.array([6, 5], dtype=jnp.int32)
    key_pos = jnp.arange(SEQ)[None, None, :]                      # (1,1,S)
    enc_self_attn_mask = jnp.broadcast_to(
        key_pos >= valid_lens[:, None, None], (BATCH, SEQ, SEQ))  # (B,S,S) bool

    params = init_params(k_p)

    enc_out, attn = encoder_layer(enc_inputs, enc_self_attn_mask, params)
    jax.block_until_ready((enc_out, attn))

    ref_out, ref_attn = encoder_layer_ref(enc_inputs, enc_self_attn_mask, params)
    assert enc_out.shape == (BATCH, SEQ, D_MODEL)
    assert attn.shape == (BATCH, N_HEADS, SEQ, SEQ)
    np.testing.assert_allclose(np.asarray(attn), np.asarray(ref_attn), rtol=1e-2, atol=1e-3)
    np.testing.assert_allclose(np.asarray(enc_out), np.asarray(ref_out), rtol=1e-2, atol=1e-2)

    print("KERNEL_OK")
</pallas_src>

<mosaic_0001>
module attributes {stable_mosaic.version = 11 : i64} {
  func.func @encoder_layer_kernel(%arg0: i32, %arg1: memref<16x128xf32, #tpu.memory_space<vmem>>, %arg2: memref<2x8x8xf32, #tpu.memory_space<vmem>>, %arg3: memref<128x384xbf16, #tpu.memory_space<vmem>>, %arg4: memref<1x384xf32, #tpu.memory_space<vmem>>, %arg5: memref<128x128xbf16, #tpu.memory_space<vmem>>, %arg6: memref<1x128xf32, #tpu.memory_space<vmem>>, %arg7: memref<1x128xf32, #tpu.memory_space<vmem>>, %arg8: memref<1x128xf32, #tpu.memory_space<vmem>>, %arg9: memref<128x256xbf16, #tpu.memory_space<vmem>>, %arg10: memref<1x256xf32, #tpu.memory_space<vmem>>, %arg11: memref<256x128xbf16, #tpu.memory_space<vmem>>, %arg12: memref<1x128xf32, #tpu.memory_space<vmem>>, %arg13: memref<16x128xf32, #tpu.memory_space<vmem>>, %arg14: memref<2x8x32xf32, #tpu.memory_space<vmem>>) attributes {dimension_semantics = [#tpu.dimension_semantics<arbitrary>], iteration_bounds = array<i64: 1>, scalar_prefetch = 0 : i64, scratch_operands = 0 : i64, tpu.core_type = #tpu.core_type<tc>, window_params = [{pipeline_mode = #tpu.pipeline_mode<synchronous>, transform_indices = @transform_0, window_bounds = array<i64: 16, 128>}, {pipeline_mode = #tpu.pipeline_mode<synchronous>, transform_indices = @transform_1, window_bounds = array<i64: 2, 8, 8>}, {pipeline_mode = #tpu.pipeline_mode<synchronous>, transform_indices = @transform_2, window_bounds = array<i64: 128, 384>}, {pipeline_mode = #tpu.pipeline_mode<synchronous>, transform_indices = @transform_3, window_bounds = array<i64: 1, 384>}, {pipeline_mode = #tpu.pipeline_mode<synchronous>, transform_indices = @transform_4, window_bounds = array<i64: 128, 128>}, {pipeline_mode = #tpu.pipeline_mode<synchronous>, transform_indices = @transform_5, window_bounds = array<i64: 1, 128>}, {pipeline_mode = #tpu.pipeline_mode<synchronous>, transform_indices = @transform_6, window_bounds = array<i64: 1, 128>}, {pipeline_mode = #tpu.pipeline_mode<synchronous>, transform_indices = @transform_7, window_bounds = array<i64: 1, 128>}, {pipeline_mode = #tpu.pipeline_mode<synchronous>, transform_indices = @transform_8, window_bounds = array<i64: 128, 256>}, {pipeline_mode = #tpu.pipeline_mode<synchronous>, transform_indices = @transform_9, window_bounds = array<i64: 1, 256>}, {pipeline_mode = #tpu.pipeline_mode<synchronous>, transform_indices = @transform_10, window_bounds = array<i64: 256, 128>}, {pipeline_mode = #tpu.pipeline_mode<synchronous>, transform_indices = @transform_11, window_bounds = array<i64: 1, 128>}, {pipeline_mode = #tpu.pipeline_mode<synchronous>, transform_indices = @transform_12, window_bounds = array<i64: 16, 128>}, {pipeline_mode = #tpu.pipeline_mode<synchronous>, transform_indices = @transform_13, window_bounds = array<i64: 2, 8, 32>}]} {
    %c0 = arith.constant 0 : index
    %c0_0 = arith.constant 0 : index
    %0 = vector.load %arg1[%c0, %c0_0] : memref<16x128xf32, #tpu.memory_space<vmem>>, vector<16x128xf32>
    %c0_1 = arith.constant 0 : index
    %c0_2 = arith.constant 0 : index
    %1 = vector.load %arg3[%c0_1, %c0_2] : memref<128x384xbf16, #tpu.memory_space<vmem>>, vector<128x384xbf16>
    %2 = arith.extf %1 : vector<128x384xbf16> to vector<128x384xf32>
    %cst = arith.constant dense<0.000000e+00> : vector<16x384xf32>
    %3 = tpu.matmul %0, %2, %cst {dimension_numbers = #tpu.dot_dimension_numbers<[1], [0], [0], [1], [0, 0, 1, 1], [], []>} : vector<16x128xf32>, vector<128x384xf32>, vector<16x384xf32> -> vector<16x384xf32>
    %c0_3 = arith.constant 0 : index
    %c0_4 = arith.constant 0 : index
    %4 = vector.load %arg4[%c0_3, %c0_4] : memref<1x384xf32, #tpu.memory_space<vmem>>, vector<1x384xf32>
    %5 = vector.broadcast %4 : vector<1x384xf32> to vector<16x384xf32>
    %6 = arith.addf %3, %5 : vector<16x384xf32>
    %c0_5 = arith.constant 0 : index
    %c0_6 = arith.constant 0 : index
    %c0_7 = arith.constant 0 : index
    %7 = vector.load %arg2[%c0_5, %c0_6, %c0_7] : memref<2x8x8xf32, #tpu.memory_space<vmem>>, vector<1x8x8xf32>
    %8 = vector.shape_cast %7 : vector<1x8x8xf32> to vector<8x8xf32>
    %9 = vector.extract_strided_slice %6 {offsets = [0, 0], sizes = [8, 32], strides = [1, 1]} : vector<16x384xf32> to vector<8x32xf32>
    %10 = vector.extract_strided_slice %6 {offsets = [0, 128], sizes = [8, 32], strides = [1, 1]} : vector<16x384xf32> to vector<8x32xf32>
    %11 = vector.extract_strided_slice %6 {offsets = [0, 256], sizes = [8, 32], strides = [1, 1]} : vector<16x384xf32> to vector<8x32xf32>
    %cst_8 = arith.constant dense<0.000000e+00> : vector<8x8xf32>
    %12 = tpu.matmul %9, %10, %cst_8 {dimension_numbers = #tpu.dot_dimension_numbers<[1], [1], [0], [0], [0, 0, 1, 0], [], []>} : vector<8x32xf32>, vector<8x32xf32>, vector<8x8xf32> -> vector<8x8xf32>
    %13 = arith.addf %12, %8 : vector<8x8xf32>
    %cst_9 = arith.constant dense<0xFF800000> : vector<8xf32>
    %14 = vector.multi_reduction <maximumf>, %13, %cst_9 [1] : vector<8x8xf32> to vector<8xf32>
    %15 = vector.shape_cast %14 : vector<8xf32> to vector<8x1xf32>
    %16 = vector.broadcast %15 : vector<8x1xf32> to vector<8x8xf32>
    %17 = arith.subf %13, %16 : vector<8x8xf32>
    %18 = math.exp %17 : vector<8x8xf32>
    %cst_10 = arith.constant dense<0.000000e+00> : vector<8xf32>
    %19 = vector.multi_reduction <add>, %18, %cst_10 [1] : vector<8x8xf32> to vector<8xf32>
    %20 = vector.shape_cast %19 : vector<8xf32> to vector<8x1xf32>
    %21 = vector.broadcast %20 : vector<8x1xf32> to vector<8x8xf32>
    %22 = arith.divf %18, %21 : vector<8x8xf32>
    %cst_11 = arith.constant dense<0.000000e+00> : vector<8x32xf32>
    %23 = tpu.matmul %22, %11, %cst_11 {dimension_numbers = #tpu.dot_dimension_numbers<[1], [0], [0], [1], [0, 0, 1, 1], [], []>} : vector<8x8xf32>, vector<8x32xf32>, vector<8x32xf32> -> vector<8x32xf32>
    %24 = vector.extract_strided_slice %6 {offsets = [0, 32], sizes = [8, 32], strides = [1, 1]} : vector<16x384xf32> to vector<8x32xf32>
    %25 = vector.extract_strided_slice %6 {offsets = [0, 160], sizes = [8, 32], strides = [1, 1]} : vector<16x384xf32> to vector<8x32xf32>
    %26 = vector.extract_strided_slice %6 {offsets = [0, 288], sizes = [8, 32], strides = [1, 1]} : vector<16x384xf32> to vector<8x32xf32>
    %cst_12 = arith.constant dense<0.000000e+00> : vector<8x8xf32>
    %27 = tpu.matmul %24, %25, %cst_12 {dimension_numbers = #tpu.dot_dimension_numbers<[1], [1], [0], [0], [0, 0, 1, 0], [], []>} : vector<8x32xf32>, vector<8x32xf32>, vector<8x8xf32> -> vector<8x8xf32>
    %28 = arith.addf %27, %8 : vector<8x8xf32>
    %cst_13 = arith.constant dense<0xFF800000> : vector<8xf32>
    %29 = vector.multi_reduction <maximumf>, %28, %cst_13 [1] : vector<8x8xf32> to vector<8xf32>
    %30 = vector.shape_cast %29 : vector<8xf32> to vector<8x1xf32>
    %31 = vector.broadcast %30 : vector<8x1xf32> to vector<8x8xf32>
    %32 = arith.subf %28, %31 : vector<8x8xf32>
    %33 = math.exp %32 : vector<8x8xf32>
    %cst_14 = arith.constant dense<0.000000e+00> : vector<8xf32>
    %34 = vector.multi_reduction <add>, %33, %cst_14 [1] : vector<8x8xf32> to vector<8xf32>
    %35 = vector.shape_cast %34 : vector<8xf32> to vector<8x1xf32>
    %36 = vector.broadcast %35 : vector<8x1xf32> to vector<8x8xf32>
    %37 = arith.divf %33, %36 : vector<8x8xf32>
    %cst_15 = arith.constant dense<0.000000e+00> : vector<8x32xf32>
    %38 = tpu.matmul %37, %26, %cst_15 {dimension_numbers = #tpu.dot_dimension_numbers<[1], [0], [0], [1], [0, 0, 1, 1], [], []>} : vector<8x8xf32>, vector<8x32xf32>, vector<8x32xf32> -> vector<8x32xf32>
    %39 = vector.extract_strided_slice %6 {offsets = [0, 64], sizes = [8, 32], strides = [1, 1]} : vector<16x384xf32> to vector<8x32xf32>
    %40 = vector.extract_strided_slice %6 {offsets = [0, 192], sizes = [8, 32], strides = [1, 1]} : vector<16x384xf32> to vector<8x32xf32>
    %41 = vector.extract_strided_slice %6 {offsets = [0, 320], sizes = [8, 32], strides = [1, 1]} : vector<16x384xf32> to vector<8x32xf32>
    %cst_16 = arith.constant dense<0.000000e+00> : vector<8x8xf32>
    %42 = tpu.matmul %39, %40, %cst_16 {dimension_numbers = #tpu.dot_dimension_numbers<[1], [1], [0], [0], [0, 0, 1, 0], [], []>} : vector<8x32xf32>, vector<8x32xf32>, vector<8x8xf32> -> vector<8x8xf32>
    %43 = arith.addf %42, %8 : vector<8x8xf32>
    %cst_17 = arith.constant dense<0xFF800000> : vector<8xf32>
    %44 = vector.multi_reduction <maximumf>, %43, %cst_17 [1] : vector<8x8xf32> to vector<8xf32>
    %45 = vector.shape_cast %44 : vector<8xf32> to vector<8x1xf32>
    %46 = vector.broadcast %45 : vector<8x1xf32> to vector<8x8xf32>
    %47 = arith.subf %43, %46 : vector<8x8xf32>
    %48 = math.exp %47 : vector<8x8xf32>
    %cst_18 = arith.constant dense<0.000000e+00> : vector<8xf32>
    %49 = vector.multi_reduction <add>, %48, %cst_18 [1] : vector<8x8xf32> to vector<8xf32>
    %50 = vector.shape_cast %49 : vector<8xf32> to vector<8x1xf32>
    %51 = vector.broadcast %50 : vector<8x1xf32> to vector<8x8xf32>
    %52 = arith.divf %48, %51 : vector<8x8xf32>
    %cst_19 = arith.constant dense<0.000000e+00> : vector<8x32xf32>
    %53 = tpu.matmul %52, %41, %cst_19 {dimension_numbers = #tpu.dot_dimension_numbers<[1], [0], [0], [1], [0, 0, 1, 1], [], []>} : vector<8x8xf32>, vector<8x32xf32>, vector<8x32xf32> -> vector<8x32xf32>
    %54 = vector.extract_strided_slice %6 {offsets = [0, 96], sizes = [8, 32], strides = [1, 1]} : vector<16x384xf32> to vector<8x32xf32>
    %55 = vector.extract_strided_slice %6 {offsets = [0, 224], sizes = [8, 32], strides = [1, 1]} : vector<16x384xf32> to vector<8x32xf32>
    %56 = vector.extract_strided_slice %6 {offsets = [0, 352], sizes = [8, 32], strides = [1, 1]} : vector<16x384xf32> to vector<8x32xf32>
    %cst_20 = arith.constant dense<0.000000e+00> : vector<8x8xf32>
    %57 = tpu.matmul %54, %55, %cst_20 {dimension_numbers = #tpu.dot_dimension_numbers<[1], [1], [0], [0], [0, 0, 1, 0], [], []>} : vector<8x32xf32>, vector<8x32xf32>, vector<8x8xf32> -> vector<8x8xf32>
    %58 = arith.addf %57, %8 : vector<8x8xf32>
    %cst_21 = arith.constant dense<0xFF800000> : vector<8xf32>
    %59 = vector.multi_reduction <maximumf>, %58, %cst_21 [1] : vector<8x8xf32> to vector<8xf32>
    %60 = vector.shape_cast %59 : vector<8xf32> to vector<8x1xf32>
    %61 = vector.broadcast %60 : vector<8x1xf32> to vector<8x8xf32>
    %62 = arith.subf %58, %61 : vector<8x8xf32>
    %63 = math.exp %62 : vector<8x8xf32>
    %cst_22 = arith.constant dense<0.000000e+00> : vector<8xf32>
    %64 = vector.multi_reduction <add>, %63, %cst_22 [1] : vector<8x8xf32> to vector<8xf32>
    %65 = vector.shape_cast %64 : vector<8xf32> to vector<8x1xf32>
    %66 = vector.broadcast %65 : vector<8x1xf32> to vector<8x8xf32>
    %67 = arith.divf %63, %66 : vector<8x8xf32>
    %cst_23 = arith.constant dense<0.000000e+00> : vector<8x32xf32>
    %68 = tpu.matmul %67, %56, %cst_23 {dimension_numbers = #tpu.dot_dimension_numbers<[1], [0], [0], [1], [0, 0, 1, 1], [], []>} : vector<8x8xf32>, vector<8x32xf32>, vector<8x32xf32> -> vector<8x32xf32>
    %69 = tpu.concatenate %22, %37, %52, %67 in 1 : vector<8x8xf32>, vector<8x8xf32>, vector<8x8xf32>, vector<8x8xf32> -> vector<8x32xf32>
    %c0_24 = arith.constant 0 : index
    %c0_25 = arith.constant 0 : index
    %c0_26 = arith.constant 0 : index
    %70 = vector.load %arg14[%c0_24, %c0_25, %c0_26] : memref<2x8x32xf32, #tpu.memory_space<vmem>>, vector<1x8x32xf32>
    %71 = vector.shape_cast %70 : vector<1x8x32xf32> to vector<8x32xf32>
    %72 = vector.shape_cast %69 : vector<8x32xf32> to vector<1x8x32xf32>
    tpu.vector_store %arg14[%c0_24, %c0_25, %c0_26], %72 {strides = array<i32>} : memref<2x8x32xf32, #tpu.memory_space<vmem>>, vector<1x8x32xf32>,
    %73 = tpu.concatenate %23, %38, %53, %68 in 1 : vector<8x32xf32>, vector<8x32xf32>, vector<8x32xf32>, vector<8x32xf32> -> vector<8x128xf32>
    %c1 = arith.constant 1 : index
    %c0_27 = arith.constant 0 : index
    %c0_28 = arith.constant 0 : index
    %74 = vector.load %arg2[%c1, %c0_27, %c0_28] : memref<2x8x8xf32, #tpu.memory_space<vmem>>, vector<1x8x8xf32>
    %75 = vector.shape_cast %74 : vector<1x8x8xf32> to vector<8x8xf32>
    %76 = vector.extract_strided_slice %6 {offsets = [8, 0], sizes = [8, 32], strides = [1, 1]} : vector<16x384xf32> to vector<8x32xf32>
    %77 = vector.extract_strided_slice %6 {offsets = [8, 128], sizes = [8, 32], strides = [1, 1]} : vector<16x384xf32> to vector<8x32xf32>
    %78 = vector.extract_strided_slice %6 {offsets = [8, 256], sizes = [8, 32], strides = [1, 1]} : vector<16x384xf32> to vector<8x32xf32>
    %cst_29 = arith.constant dense<0.000000e+00> : vector<8x8xf32>
    %79 = tpu.matmul %76, %77, %cst_29 {dimension_numbers = #tpu.dot_dimension_numbers<[1], [1], [0], [0], [0, 0, 1, 0], [], []>} : vector<8x32xf32>, vector<8x32xf32>, vector<8x8xf32> -> vector<8x8xf32>
    %80 = arith.addf %79, %75 : vector<8x8xf32>
    %cst_30 = arith.constant dense<0xFF800000> : vector<8xf32>
    %81 = vector.multi_reduction <maximumf>, %80, %cst_30 [1] : vector<8x8xf32> to vector<8xf32>
    %82 = vector.shape_cast %81 : vector<8xf32> to vector<8x1xf32>
    %83 = vector.broadcast %82 : vector<8x1xf32> to vector<8x8xf32>
    %84 = arith.subf %80, %83 : vector<8x8xf32>
    %85 = math.exp %84 : vector<8x8xf32>
    %cst_31 = arith.constant dense<0.000000e+00> : vector<8xf32>
    %86 = vector.multi_reduction <add>, %85, %cst_31 [1] : vector<8x8xf32> to vector<8xf32>
    %87 = vector.shape_cast %86 : vector<8xf32> to vector<8x1xf32>
    %88 = vector.broadcast %87 : vector<8x1xf32> to vector<8x8xf32>
    %89 = arith.divf %85, %88 : vector<8x8xf32>
    %cst_32 = arith.constant dense<0.000000e+00> : vector<8x32xf32>
    %90 = tpu.matmul %89, %78, %cst_32 {dimension_numbers = #tpu.dot_dimension_numbers<[1], [0], [0], [1], [0, 0, 1, 1], [], []>} : vector<8x8xf32>, vector<8x32xf32>, vector<8x32xf32> -> vector<8x32xf32>
    %91 = vector.extract_strided_slice %6 {offsets = [8, 32], sizes = [8, 32], strides = [1, 1]} : vector<16x384xf32> to vector<8x32xf32>
    %92 = vector.extract_strided_slice %6 {offsets = [8, 160], sizes = [8, 32], strides = [1, 1]} : vector<16x384xf32> to vector<8x32xf32>
    %93 = vector.extract_strided_slice %6 {offsets = [8, 288], sizes = [8, 32], strides = [1, 1]} : vector<16x384xf32> to vector<8x32xf32>
    %cst_33 = arith.constant dense<0.000000e+00> : vector<8x8xf32>
    %94 = tpu.matmul %91, %92, %cst_33 {dimension_numbers = #tpu.dot_dimension_numbers<[1], [1], [0], [0], [0, 0, 1, 0], [], []>} : vector<8x32xf32>, vector<8x32xf32>, vector<8x8xf32> -> vector<8x8xf32>
    %95 = arith.addf %94, %75 : vector<8x8xf32>
    %cst_34 = arith.constant dense<0xFF800000> : vector<8xf32>
    %96 = vector.multi_reduction <maximumf>, %95, %cst_34 [1] : vector<8x8xf32> to vector<8xf32>
    %97 = vector.shape_cast %96 : vector<8xf32> to vector<8x1xf32>
    %98 = vector.broadcast %97 : vector<8x1xf32> to vector<8x8xf32>
    %99 = arith.subf %95, %98 : vector<8x8xf32>
    %100 = math.exp %99 : vector<8x8xf32>
    %cst_35 = arith.constant dense<0.000000e+00> : vector<8xf32>
    %101 = vector.multi_reduction <add>, %100, %cst_35 [1] : vector<8x8xf32> to vector<8xf32>
    %102 = vector.shape_cast %101 : vector<8xf32> to vector<8x1xf32>
    %103 = vector.broadcast %102 : vector<8x1xf32> to vector<8x8xf32>
    %104 = arith.divf %100, %103 : vector<8x8xf32>
    %cst_36 = arith.constant dense<0.000000e+00> : vector<8x32xf32>
    %105 = tpu.matmul %104, %93, %cst_36 {dimension_numbers = #tpu.dot_dimension_numbers<[1], [0], [0], [1], [0, 0, 1, 1], [], []>} : vector<8x8xf32>, vector<8x32xf32>, vector<8x32xf32> -> vector<8x32xf32>
    %106 = vector.extract_strided_slice %6 {offsets = [8, 64], sizes = [8, 32], strides = [1, 1]} : vector<16x384xf32> to vector<8x32xf32>
    %107 = vector.extract_strided_slice %6 {offsets = [8, 192], sizes = [8, 32], strides = [1, 1]} : vector<16x384xf32> to vector<8x32xf32>
    %108 = vector.extract_strided_slice %6 {offsets = [8, 320], sizes = [8, 32], strides = [1, 1]} : vector<16x384xf32> to vector<8x32xf32>
    %cst_37 = arith.constant dense<0.000000e+00> : vector<8x8xf32>
    %109 = tpu.matmul %106, %107, %cst_37 {dimension_numbers = #tpu.dot_dimension_numbers<[1], [1], [0], [0], [0, 0, 1, 0], [], []>} : vector<8x32xf32>, vector<8x32xf32>, vector<8x8xf32> -> vector<8x8xf32>
    %110 = arith.addf %109, %75 : vector<8x8xf32>
    %cst_38 = arith.constant dense<0xFF800000> : vector<8xf32>
    %111 = vector.multi_reduction <maximumf>, %110, %cst_38 [1] : vector<8x8xf32> to vector<8xf32>
    %112 = vector.shape_cast %111 : vector<8xf32> to vector<8x1xf32>
    %113 = vector.broadcast %112 : vector<8x1xf32> to vector<8x8xf32>
    %114 = arith.subf %110, %113 : vector<8x8xf32>
    %115 = math.exp %114 : vector<8x8xf32>
    %cst_39 = arith.constant dense<0.000000e+00> : vector<8xf32>
    %116 = vector.multi_reduction <add>, %115, %cst_39 [1] : vector<8x8xf32> to vector<8xf32>
    %117 = vector.shape_cast %116 : vector<8xf32> to vector<8x1xf32>
    %118 = vector.broadcast %117 : vector<8x1xf32> to vector<8x8xf32>
    %119 = arith.divf %115, %118 : vector<8x8xf32>
    %cst_40 = arith.constant dense<0.000000e+00> : vector<8x32xf32>
    %120 = tpu.matmul %119, %108, %cst_40 {dimension_numbers = #tpu.dot_dimension_numbers<[1], [0], [0], [1], [0, 0, 1, 1], [], []>} : vector<8x8xf32>, vector<8x32xf32>, vector<8x32xf32> -> vector<8x32xf32>
    %121 = vector.extract_strided_slice %6 {offsets = [8, 96], sizes = [8, 32], strides = [1, 1]} : vector<16x384xf32> to vector<8x32xf32>
    %122 = vector.extract_strided_slice %6 {offsets = [8, 224], sizes = [8, 32], strides = [1, 1]} : vector<16x384xf32> to vector<8x32xf32>
    %123 = vector.extract_strided_slice %6 {offsets = [8, 352], sizes = [8, 32], strides = [1, 1]} : vector<16x384xf32> to vector<8x32xf32>
    %cst_41 = arith.constant dense<0.000000e+00> : vector<8x8xf32>
    %124 = tpu.matmul %121, %122, %cst_41 {dimension_numbers = #tpu.dot_dimension_numbers<[1], [1], [0], [0], [0, 0, 1, 0], [], []>} : vector<8x32xf32>, vector<8x32xf32>, vector<8x8xf32> -> vector<8x8xf32>
    %125 = arith.addf %124, %75 : vector<8x8xf32>
    %cst_42 = arith.constant dense<0xFF800000> : vector<8xf32>
    %126 = vector.multi_reduction <maximumf>, %125, %cst_42 [1] : vector<8x8xf32> to vector<8xf32>
    %127 = vector.shape_cast %126 : vector<8xf32> to vector<8x1xf32>
    %128 = vector.broadcast %127 : vector<8x1xf32> to vector<8x8xf32>
    %129 = arith.subf %125, %128 : vector<8x8xf32>
    %130 = math.exp %129 : vector<8x8xf32>
    %cst_43 = arith.constant dense<0.000000e+00> : vector<8xf32>
    %131 = vector.multi_reduction <add>, %130, %cst_43 [1] : vector<8x8xf32> to vector<8xf32>
    %132 = vector.shape_cast %131 : vector<8xf32> to vector<8x1xf32>
    %133 = vector.broadcast %132 : vector<8x1xf32> to vector<8x8xf32>
    %134 = arith.divf %130, %133 : vector<8x8xf32>
    %cst_44 = arith.constant dense<0.000000e+00> : vector<8x32xf32>
    %135 = tpu.matmul %134, %123, %cst_44 {dimension_numbers = #tpu.dot_dimension_numbers<[1], [0], [0], [1], [0, 0, 1, 1], [], []>} : vector<8x8xf32>, vector<8x32xf32>, vector<8x32xf32> -> vector<8x32xf32>
    %136 = tpu.concatenate %89, %104, %119, %134 in 1 : vector<8x8xf32>, vector<8x8xf32>, vector<8x8xf32>, vector<8x8xf32> -> vector<8x32xf32>
    %c1_45 = arith.constant 1 : index
    %c0_46 = arith.constant 0 : index
    %c0_47 = arith.constant 0 : index
    %137 = vector.load %arg14[%c1_45, %c0_46, %c0_47] : memref<2x8x32xf32, #tpu.memory_space<vmem>>, vector<1x8x32xf32>
    %138 = vector.shape_cast %137 : vector<1x8x32xf32> to vector<8x32xf32>
    %139 = vector.shape_cast %136 : vector<8x32xf32> to vector<1x8x32xf32>
    tpu.vector_store %arg14[%c1_45, %c0_46, %c0_47], %139 {strides = array<i32>} : memref<2x8x32xf32, #tpu.memory_space<vmem>>, vector<1x8x32xf32>,
    %140 = tpu.concatenate %90, %105, %120, %135 in 1 : vector<8x32xf32>, vector<8x32xf32>, vector<8x32xf32>, vector<8x32xf32> -> vector<8x128xf32>
    %141 = tpu.concatenate %73, %140 in 0 : vector<8x128xf32>, vector<8x128xf32> -> vector<16x128xf32>
    %c0_48 = arith.constant 0 : index
    %c0_49 = arith.constant 0 : index
    %142 = vector.load %arg5[%c0_48, %c0_49] : memref<128x128xbf16, #tpu.memory_space<vmem>>, vector<128x128xbf16>
    %143 = arith.extf %142 : vector<128x128xbf16> to vector<128x128xf32>
    %cst_50 = arith.constant dense<0.000000e+00> : vector<16x128xf32>
    %144 = tpu.matmul %141, %143, %cst_50 {dimension_numbers = #tpu.dot_dimension_numbers<[1], [0], [0], [1], [0, 0, 1, 1], [], []>} : vector<16x128xf32>, vector<128x128xf32>, vector<16x128xf32> -> vector<16x128xf32>
    %c0_51 = arith.constant 0 : index
    %c0_52 = arith.constant 0 : index
    %145 = vector.load %arg6[%c0_51, %c0_52] : memref<1x128xf32, #tpu.memory_space<vmem>>, vector<1x128xf32>
    %146 = vector.broadcast %145 : vector<1x128xf32> to vector<16x128xf32>
    %147 = arith.addf %144, %146 : vector<16x128xf32>
    %148 = arith.addf %147, %0 : vector<16x128xf32>
    %cst_53 = arith.constant dense<0.000000e+00> : vector<16xf32>
    %149 = vector.multi_reduction <add>, %148, %cst_53 [1] : vector<16x128xf32> to vector<16xf32>
    %150 = vector.shape_cast %149 : vector<16xf32> to vector<16x1xf32>
    %cst_54 = arith.constant 1.280000e+02 : f32
    %151 = vector.broadcast %cst_54 : f32 to vector<16x1xf32>
    %152 = arith.divf %150, %151 : vector<16x1xf32>
    %153 = vector.broadcast %152 : vector<16x1xf32> to vector<16x128xf32>
    %154 = arith.subf %148, %153 : vector<16x128xf32>
    %155 = arith.mulf %154, %154 : vector<16x128xf32>
    %cst_55 = arith.constant dense<0.000000e+00> : vector<16xf32>
    %156 = vector.multi_reduction <add>, %155, %cst_55 [1] : vector<16x128xf32> to vector<16xf32>
    %157 = vector.shape_cast %156 : vector<16xf32> to vector<16x1xf32>
    %cst_56 = arith.constant 1.280000e+02 : f32
    %158 = vector.broadcast %cst_56 : f32 to vector<16x1xf32>
    %159 = arith.divf %157, %158 : vector<16x1xf32>
    %160 = vector.broadcast %152 : vector<16x1xf32> to vector<16x128xf32>
    %161 = arith.subf %148, %160 : vector<16x128xf32>
    %cst_57 = arith.constant 9.99999974E-6 : f32
    %162 = vector.broadcast %cst_57 : f32 to vector<16x1xf32>
    %163 = arith.addf %159, %162 : vector<16x1xf32>
    %164 = math.rsqrt %163 : vector<16x1xf32>
    %165 = vector.broadcast %164 : vector<16x1xf32> to vector<16x128xf32>
    %166 = arith.mulf %161, %165 : vector<16x128xf32>
    %c0_58 = arith.constant 0 : index
    %c0_59 = arith.constant 0 : index
    %167 = vector.load %arg7[%c0_58, %c0_59] : memref<1x128xf32, #tpu.memory_space<vmem>>, vector<1x128xf32>
    %168 = vector.broadcast %167 : vector<1x128xf32> to vector<16x128xf32>
    %169 = arith.mulf %166, %168 : vector<16x128xf32>
    %c0_60 = arith.constant 0 : index
    %c0_61 = arith.constant 0 : index
    %170 = vector.load %arg8[%c0_60, %c0_61] : memref<1x128xf32, #tpu.memory_space<vmem>>, vector<1x128xf32>
    %171 = vector.broadcast %170 : vector<1x128xf32> to vector<16x128xf32>
    %172 = arith.addf %169, %171 : vector<16x128xf32>
    %c0_62 = arith.constant 0 : index
    %c0_63 = arith.constant 0 : index
    %173 = vector.load %arg9[%c0_62, %c0_63] : memref<128x256xbf16, #tpu.memory_space<vmem>>, vector<128x256xbf16>
    %174 = arith.extf %173 : vector<128x256xbf16> to vector<128x256xf32>
    %cst_64 = arith.constant dense<0.000000e+00> : vector<16x256xf32>
    %175 = tpu.matmul %172, %174, %cst_64 {dimension_numbers = #tpu.dot_dimension_numbers<[1], [0], [0], [1], [0, 0, 1, 1], [], []>} : vector<16x128xf32>, vector<128x256xf32>, vector<16x256xf32> -> vector<16x256xf32>
    %c0_65 = arith.constant 0 : index
    %c0_66 = arith.constant 0 : index
    %176 = vector.load %arg10[%c0_65, %c0_66] : memref<1x256xf32, #tpu.memory_space<vmem>>, vector<1x256xf32>
    %177 = vector.broadcast %176 : vector<1x256xf32> to vector<16x256xf32>
    %178 = arith.addf %175, %177 : vector<16x256xf32>
    %cst_67 = arith.constant 5.000000e-01 : f32
    %179 = vector.broadcast %cst_67 : f32 to vector<16x256xf32>
    %180 = arith.mulf %179, %178 : vector<16x256xf32>
    %cst_68 = arith.constant 4.471500e-02 : f32
    %181 = vector.broadcast %cst_68 : f32 to vector<16x256xf32>
    %182 = arith.mulf %181, %178 : vector<16x256xf32>
    %183 = arith.mulf %182, %178 : vector<16x256xf32>
    %184 = arith.mulf %183, %178 : vector<16x256xf32>
    %185 = arith.addf %178, %184 : vector<16x256xf32>
    %cst_69 = arith.constant 0.797884583 : f32
    %186 = vector.broadcast %cst_69 : f32 to vector<16x256xf32>
    %187 = arith.mulf %186, %185 : vector<16x256xf32>
    %188 = math.tanh %187 : vector<16x256xf32>
    %cst_70 = arith.constant 1.000000e+00 : f32
    %189 = vector.broadcast %cst_70 : f32 to vector<16x256xf32>
    %190 = arith.addf %189, %188 : vector<16x256xf32>
    %191 = arith.mulf %180, %190 : vector<16x256xf32>
    %c0_71 = arith.constant 0 : index
    %c0_72 = arith.constant 0 : index
    %192 = vector.load %arg11[%c0_71, %c0_72] : memref<256x128xbf16, #tpu.memory_space<vmem>>, vector<256x128xbf16>
    %193 = arith.extf %192 : vector<256x128xbf16> to vector<256x128xf32>
    %cst_73 = arith.constant dense<0.000000e+00> : vector<16x128xf32>
    %194 = tpu.matmul %191, %193, %cst_73 {dimension_numbers = #tpu.dot_dimension_numbers<[1], [0], [0], [1], [0, 0, 1, 1], [], []>} : vector<16x256xf32>, vector<256x128xf32>, vector<16x128xf32> -> vector<16x128xf32>
    %c0_74 = arith.constant 0 : index
    %c0_75 = arith.constant 0 : index
    %195 = vector.load %arg12[%c0_74, %c0_75] : memref<1x128xf32, #tpu.memory_space<vmem>>, vector<1x128xf32>
    %196 = vector.broadcast %195 : vector<1x128xf32> to vector<16x128xf32>
    %197 = arith.addf %194, %196 : vector<16x128xf32>
    %c0_76 = arith.constant 0 : index
    %c0_77 = arith.constant 0 : index
    %198 = vector.load %arg13[%c0_76, %c0_77] : memref<16x128xf32, #tpu.memory_space<vmem>>, vector<16x128xf32>
    tpu.vector_store %arg13[%c0_76, %c0_77], %197 {strides = array<i32>} : memref<16x128xf32, #tpu.memory_space<vmem>>, vector<16x128xf32>,
    return
  }
  func.func @transform_0(%arg0: i32) -> (i32, i32) {
    %c0_i32 = arith.constant 0 : i32
    %c0_i32_0 = arith.constant 0 : i32
    %c0_i32_1 = arith.constant 0 : i32
    return %c0_i32, %c0_i32_0 : i32, i32
  }
  func.func @transform_1(%arg0: i32) -> (i32, i32, i32) {
    %c0_i32 = arith.constant 0 : i32
    %c0_i32_0 = arith.constant 0 : i32
    %c0_i32_1 = arith.constant 0 : i32
    %c0_i32_2 = arith.constant 0 : i32
    return %c0_i32, %c0_i32_0, %c0_i32_1 : i32, i32, i32
  }
  func.func @transform_2(%arg0: i32) -> (i32, i32) {
    %c0_i32 = arith.constant 0 : i32
    %c0_i32_0 = arith.constant 0 : i32
    %c0_i32_1 = arith.constant 0 : i32
    return %c0_i32, %c0_i32_0 : i32, i32
  }
  func.func @transform_3(%arg0: i32) -> (i32, i32) {
    %c0_i32 = arith.constant 0 : i32
    %c0_i32_0 = arith.constant 0 : i32
    %c0_i32_1 = arith.constant 0 : i32
    return %c0_i32, %c0_i32_0 : i32, i32
  }
  func.func @transform_4(%arg0: i32) -> (i32, i32) {
    %c0_i32 = arith.constant 0 : i32
    %c0_i32_0 = arith.constant 0 : i32
    %c0_i32_1 = arith.constant 0 : i32
    return %c0_i32, %c0_i32_0 : i32, i32
  }
  func.func @transform_5(%arg0: i32) -> (i32, i32) {
    %c0_i32 = arith.constant 0 : i32
    %c0_i32_0 = arith.constant 0 : i32
    %c0_i32_1 = arith.constant 0 : i32
    return %c0_i32, %c0_i32_0 : i32, i32
  }
  func.func @transform_6(%arg0: i32) -> (i32, i32) {
    %c0_i32 = arith.constant 0 : i32
    %c0_i32_0 = arith.constant 0 : i32
    %c0_i32_1 = arith.constant 0 : i32
    return %c0_i32, %c0_i32_0 : i32, i32
  }
  func.func @transform_7(%arg0: i32) -> (i32, i32) {
    %c0_i32 = arith.constant 0 : i32
    %c0_i32_0 = arith.constant 0 : i32
    %c0_i32_1 = arith.constant 0 : i32
    return %c0_i32, %c0_i32_0 : i32, i32
  }
  func.func @transform_8(%arg0: i32) -> (i32, i32) {
    %c0_i32 = arith.constant 0 : i32
    %c0_i32_0 = arith.constant 0 : i32
    %c0_i32_1 = arith.constant 0 : i32
    return %c0_i32, %c0_i32_0 : i32, i32
  }
  func.func @transform_9(%arg0: i32) -> (i32, i32) {
    %c0_i32 = arith.constant 0 : i32
    %c0_i32_0 = arith.constant 0 : i32
    %c0_i32_1 = arith.constant 0 : i32
    return %c0_i32, %c0_i32_0 : i32, i32
  }
  func.func @transform_10(%arg0: i32) -> (i32, i32) {
    %c0_i32 = arith.constant 0 : i32
    %c0_i32_0 = arith.constant 0 : i32
    %c0_i32_1 = arith.constant 0 : i32
    return %c0_i32, %c0_i32_0 : i32, i32
  }
  func.func @transform_11(%arg0: i32) -> (i32, i32) {
    %c0_i32 = arith.constant 0 : i32
    %c0_i32_0 = arith.constant 0 : i32
    %c0_i32_1 = arith.constant 0 : i32
    return %c0_i32, %c0_i32_0 : i32, i32
  }
  func.func @transform_12(%arg0: i32) -> (i32, i32) {
    %c0_i32 = arith.constant 0 : i32
    %c0_i32_0 = arith.constant 0 : i32
    %c0_i32_1 = arith.constant 0 : i32
    return %c0_i32, %c0_i32_0 : i32, i32
  }
  func.func @transform_13(%arg0: i32) -> (i32, i32, i32) {
    %c0_i32 = arith.constant 0 : i32
    %c0_i32_0 = arith.constant 0 : i32
    %c0_i32_1 = arith.constant 0 : i32
    %c0_i32_2 = arith.constant 0 : i32
    return %c0_i32, %c0_i32_0, %c0_i32_1 : i32, i32, i32
  }
}

</mosaic_0001>

<bundles_post_ra>
// kernel: encoder_layer.1
= control target key start
LH: loop header
LB: loop body
LE: loop exit
PB: predicated region body
PF: predicated region fallthrough
CT: control target
= control target key end

     0   :  { %v2932_v2 = vmov 0.0   ;;  %s3487_s0 = inlined_call_operand.vmem [shape: f32[16,128], index: 0, kind: input, shape index: {}]   ;;  %s3488_s1 = inlined_call_operand.vmem [shape: f32[2,8,8], index: 1, kind: input, shape index: {}]   ;;  %s3489_s2 = inlined_call_operand.vmem [shape: bf16[128,384], index: 2, kind: input, shape index: {}]   ;;  %s3490_s3 = inlined_call_operand.vmem [shape: f32[1,384], index: 3, kind: input, shape index: {}]   ;;  %s3491_s4 = inlined_call_operand.vmem [shape: bf16[128,128], index: 4, kind: input, shape index: {}]   ;;  %s3492_s5 = inlined_call_operand.vmem [shape: f32[1,128], index: 5, kind: input, shape index: {}]   ;;  %s3493_s6 = inlined_call_operand.vmem [shape: f32[1,128], index: 6, kind: input, shape index: {}]   ;;  %s3494_s7 = inlined_call_operand.vmem [shape: f32[1,128], index: 7, kind: input, shape index: {}]   ;;  %s3495_s8 = inlined_call_operand.vmem [shape: bf16[128,256], index: 8, kind: input, shape index: {}]   ;;  %s3496_s9 = inlined_call_operand.vmem [shape: f32[1,256], index: 9, kind: input, shape index: {}]   ;;  %s3497_s10 = inlined_call_operand.vmem [shape: bf16[256,128], index: 10, kind: input, shape index: {}]   ;;  %s3498_s11 = inlined_call_operand.vmem [shape: f32[1,128], index: 11, kind: input, shape index: {}]   ;;  %s3499_s12 = inlined_call_operand.hbm [shape: f32[16,128], index: 12, kind: output, shape index: {0}]   ;;  %s3500_s13 = inlined_call_operand.vmem [shape: f32[2,8,32], index: 13, kind: output, shape index: {1}]  }
   0x1   :  { %v2808_v0 = vld [vmem:[%s3489_s2 + $0x4] ss:$12 sps:$4 sm:$0xff]   ;;  %v2810_v1 = vld [vmem:[%s3489_s2] ss:$12 sps:$4 sm:$0xff]   ;;  %207 = vmatprep.mubr.f32.mxu0 %v2932_v2  ;;  %v2811_v3 = vld [vmem:[%s3489_s2 + $0x1c] ss:$12 sps:$4 sm:$0xff]  }
   0x2   :  { %2576 = vmatprep.subr.bf16.mxu0 %v2808_v0  ;;  %v2813_v4 = vld [vmem:[%s3489_s2 + $0x18] ss:$12 sps:$4 sm:$0xff]   ;;  %v2814_v5 = vld [vmem:[%s3489_s2 + $0x34] ss:$12 sps:$4 sm:$0xff]   ;;  %v2816_v6 = vld [vmem:[%s3489_s2 + $0x30] ss:$12 sps:$4 sm:$0xff]  }
   0x3   :  { %2578 = vmatpush1.bf16.msra.mxu0 %v2810_v1  ;;  %v2817_v7 = vld [vmem:[%s3489_s2 + $0x4c] ss:$12 sps:$4 sm:$0xff]   ;;  %v2819_v8 = vld [vmem:[%s3489_s2 + $0x48] ss:$12 sps:$4 sm:$0xff]   ;;  %v3040_v9 = vld [vmem:[%s3487_s0] sm:$0xff] }
   0x4   :  { %2580 = vmatprep.subr.bf16.mxu0 %v2811_v3  ;;  %v2820_v10 = vld [vmem:[%s3489_s2 + $0x64] ss:$12 sps:$4 sm:$0xff]   ;;  %2457 = vmatprep.mubr.f32.mxu1 %v3040_v9  ;;  %v2822_v11 = vld [vmem:[%s3489_s2 + $0x60] ss:$12 sps:$4 sm:$0xff]   ;;  %v2823_v12 = vld [vmem:[%s3489_s2 + $0x7c] ss:$12 sps:$4 sm:$0xff]  }
   0x5   :  { %v2825_v13 = vld [vmem:[%s3489_s2 + $0x78] ss:$12 sps:$4 sm:$0xff]   ;;  %v2826_v14 = vld [vmem:[%s3489_s2 + $0x94] ss:$12 sps:$4 sm:$0xff]  }
   0x7   :  { %2582 = vmatpush1.bf16.msra.mxu0 %v2813_v4 }
   0x8   :  { %2584 = vmatprep.subr.bf16.mxu0 %v2814_v5 }
   0xb   :  { %2586 = vmatpush1.bf16.msra.mxu0 %v2816_v6 }
   0xc   :  { %2588 = vmatprep.subr.bf16.mxu0 %v2817_v7 }
   0xf   :  { %2590 = vmatpush1.bf16.msra.mxu0 %v2819_v8 }
  0x10   :  { %2592 = vmatprep.subr.bf16.mxu0 %v2820_v10 }
  0x13   :  { %2594 = vmatpush1.bf16.msra.mxu0 %v2822_v11 }
  0x14   :  { %2596 = vmatprep.subr.bf16.mxu0 %v2823_v12 }
  0x15   :  { %19 = vsyncpa [#allocation3], 0  ;;  %v2828_v15 = vld [vmem:[%s3489_s2 + $0x90] ss:$12 sps:$4 sm:$0xff]   ;;  %v2829_v16 = vld [vmem:[%s3489_s2 + $0xac] ss:$12 sps:$4 sm:$0xff]   ;;  %v128_v19 = vlaneseq }
  0x16   :  { %v2831_v17 = vld [vmem:[%s3489_s2 + $0xa8] ss:$12 sps:$4 sm:$0xff]   ;;  %vm2933_vm0 = vmmov 0   ;;  %v126_v22 = vld [vmem:[%s3490_s3] sm:$0x7]  ;;  %vm296_vm1 = vcmask 261120  }
  0x17   :  { %2598 = vmatpush1.bf16.msra.mxu0 %v2825_v13  ;;  %v3073_v18 = vld [vmem:[%s3487_s0 + $0x8] sm:$0xff]  ;;  %v3078_v20 = vshrl.u32 %v128_v19, 7  ;;  %s2934_s0 = smov 96   ;;  %v2834_v34 = vld [vmem:[%s3489_s2 + $0x38] ss:$12 sps:$4 sm:$0xff]   ;;  %vm373_vm2 = vcmask 64512  }
  0x18   :  { %2600 = vmatprep.subr.bf16.mxu0 %v2826_v14  ;;  %v2832_v32 = vld [vmem:[%s3489_s2 + $0x8] ss:$12 sps:$4 sm:$0xff]   ;;  %v2833_v33 = vld [vmem:[%s3489_s2 + $0x20] ss:$12 sps:$4 sm:$0xff]   ;;  %v2835_v35 = vld [vmem:[%s3489_s2 + $0x50] ss:$12 sps:$4 sm:$0xff]  }
  0x19   :  { %v134_v21 = vsub.s32 1, %v3078_v20  ;;  %v130_v23 = vsub.s32 0, %v3078_v20  ;;  %2608 = vmatprep.subr.bf16.mxu1 %v2832_v32  ;;  %v2836_v36 = vld [vmem:[%s3489_s2 + $0x68] ss:$12 sps:$4 sm:$0xff]   ;;  %v2837_v37 = vld [vmem:[%s3489_s2 + $0x80] ss:$12 sps:$4 sm:$0xff]  }
  0x1a   :  { %2610 = vmatpush3.bf16.msra.mxu1 %v2832_v32  ;;  %v2838_v38 = vld [vmem:[%s3489_s2 + $0x98] ss:$12 sps:$4 sm:$0xff]   ;;  %v2839_v39 = vld [vmem:[%s3489_s2 + $0xb0] ss:$12 sps:$4 sm:$0xff]   ;;  %v138_v50 = vsub.s32 2, %v3078_v20  ;;  %s2935_s2 = smov 64  }
  0x1b   :  { %2602 = vmatpush1.bf16.msra.mxu0 %v2828_v15  ;;  %v3087_v24 = vrot.slane %v126_v22, %v134_v21  ;;  %v3091_v26 = vrot.slane %v126_v22, %v130_v23  ;;  %2612 = vmatprep.subr.bf16.mxu1 %v2833_v33  ;;  %v3145_v40 = vld [vmem:[%s3488_s1] sm:$0xff]  ;;  %s2936_s3 = smov 32   ;;  %vm982_vm3 = vcmask 523264   ;;  %vm984_vm4 = vcmask 785408  }
  0x1c   :  { %2604 = vmatprep.subr.bf16.mxu0 %v2829_v16  ;;  %v139_v51 = vrot.slane %v126_v22, %v138_v50  ;;  %vm966_vm5 = vcmask 195584   ;;  %vm964_vm6 = vcmask 130048  }
  0x1e   :  { %2614 = vmatpush3.bf16.msra.mxu1 %v2833_v33  ;;  %v2183_v33 = vld [vmem:[%s3488_s1 + $0x8] sm:$0xff] }
  0x1f   :  { %2606 = vmatpush1.bf16.msra.mxu0 %v2831_v17  ;;  %2616 = vmatprep.subr.bf16.mxu1 %v2834_v34 }
  0x20   :  { %2460 = vmatprep.subr.mxu0 %v2932_v2 }
  0x22   :  { %208 = vmatmul.mubr.f32.vlgmr.msra.gmra.mrb[0].mxu0 %v3040_v9  ;;  %2618 = vmatpush3.bf16.msra.mxu1 %v2834_v34 }
  0x23   :  { %213 = vmatprep.mubr.f32.mxu0 %v2932_v2  ;;  %2620 = vmatprep.subr.bf16.mxu1 %v2835_v35 }
  0x26   :  { %214 = vmatmul.mubr.f32.gmra.mrb[2].mxu0 %v3073_v18  ;;  %2622 = vmatpush3.bf16.msra.mxu1 %v2835_v35 }
  0x27   :  { %2462 = vmatprep.mubr.msk.f32.mxu0 %vm2933_vm0, %v2932_v2  ;;  %2624 = vmatprep.subr.bf16.mxu1 %v2836_v36 }
  0x2a   :  { %2626 = vmatpush3.bf16.msra.mxu1 %v2836_v36 }
  0x2b   :  { %2628 = vmatprep.subr.bf16.mxu1 %v2837_v37 }
  0x2e   :  { %2630 = vmatpush3.bf16.msra.mxu1 %v2837_v37 }
  0x2f   :  { %2632 = vmatprep.subr.bf16.mxu1 %v2838_v38 }
  0x32   :  { %2634 = vmatpush3.bf16.msra.mxu1 %v2838_v38 }
  0x33   :  { %2636 = vmatprep.subr.bf16.mxu1 %v2839_v39 }
  0x36   :  { %2638 = vmatpush3.bf16.msra.mxu1 %v2839_v39 }
  0x37   :  { %2490 = vmatprep.subr.mxu1 %v2932_v2 }
  0x39   :  { %2458 = vmatmul.mubr.f32.vlgmr.msra.gmra.mrb[0].mxu1 %v3073_v18 }
  0x3a   :  { %2492 = vmatprep.mubr.msk.f32.mxu1 %vm2933_vm0, %v2932_v2 }
  0xf5   :  { %v209_v25 = vpop.f32.mrb[0].mxu0 }
  0xf6   :  { %v211_v27 = vpop.f32.mrb[1].mxu0  ;;  %v3101_v29 = vadd.f32 %v209_v25, %v3091_v26 }
  0xf7   :  { %v3094_v28 = vadd.f32 %v211_v27, %v3087_v24 }
  0xf9   :  { %460 = vrot.lane.b32.xlu1 %v3094_v28, %s2934_s0  ;;  %2461 = vmatpush3.xpose.msk.msra.mxu0 %vm296_vm1, %v3094_v28  ;;  %v3110_v30 = vpop.f32.mrb[2].mxu0 }
  0xfa   :  { %2465 = vmatprep.subr.mxu0 %v2932_v2  ;;  %v3112_v31 = vpop.f32.mrb[3].mxu0  ;;  %v216_v5 = vadd.f32 %v3110_v30, %v3091_v26 }
  0xfb   :  { %v218_v4 = vadd.f32 %v3112_v31, %v3087_v24 }
  0xfc   :  { %2463 = vmatmul.mubr.msk.f32.vlgmr.msra.gmra.mrb[4].mxu0 %vm296_vm1, %v3101_v29 }
  0xfd   :  { %458 = vrot.lane.b32.xlu1 %v3101_v29, %s2934_s0  ;;  %2467 = vmatprep.mubr.msk.f32.mxu0 %vm2933_vm0, %v2932_v2 }
 0x10c   :  { %v2459_v52 = vpop.f32.mrb[0].mxu1 }
 0x10d   :  { %v286_v53 = vpop.f32.mrb[1].mxu1  ;;  %v3151_v54 = vadd.f32 %v2459_v52, %v139_v51 }
 0x10e   :  { %v3153_v55 = vadd.f32 %v286_v53, %v139_v51 }
 0x110   :  { %2466 = vmatpush3.msra.mxu0 %v3153_v55 }
 0x111   :  { %2470 = vmatprep.subr.mxu0 %v2932_v2 }
 0x16b   :  { %v461_v58 = vpop.permute.xlu1 %460 }
 0x16f   :  { %v459_v60 = vpop.permute.xlu1 %458 }
 0x1cf   :  { %v369_v41 = vpop.f32.mrb[4].mxu0 }
 0x1d0   :  { %v370_v42 = vadd.f32 %v369_v41, %v3145_v40  ;;  %v2464_v43 = vpop.f32.mrb[5].mxu0 }
 0x1d2   :  { %v374_v44 = vsel %vm373_vm2, %v370_v42, -inf }
 0x1d3   :  { %375 = vmax.xlane.f32.xlu0 %v374_v44 }
 0x260   :  { %v376_v45 = vpop.xlane.xlu0 %375 }
 0x261   :  { %v377_v46 = vsub.f32 %v370_v42, %v376_v45 }
 0x263   :  { %v378_v47 = vmul.f32 1.442695, %v377_v46 }
 0x265   :  { %2864 = vpow2.f32 %v378_v47 }
 0x26f   :  { %v2865_v48 = vpop.eup %2864 }
 0x270   :  { %v380_v49 = vsel %vm373_vm2, %v2865_v48, 0.0 }
 0x271   :  { %381 = vadd.xlane.f32.xlu0 %v380_v49 }
 0x2fe   :  { %v382_v56 = vpop.xlane.xlu0 %381 }
 0x2ff   :  { %2866 = vrcp.f32 %v382_v56 }
 0x309   :  { %v2867_v57 = vpop.eup %2866 }
 0x30a   :  { %v3157_v59 = vmul.f32 %v2867_v57, %v2865_v48 }
 0x30c   :  { %2468 = vmatmul.mubr.msk.f32.vlgmr.msra.gmra.mrb[6].mxu0 %vm373_vm2, %v3157_v59 }
 0x30d   :  { %2471 = vmatpush3.xpose.msk.msra.mxu0 %vm296_vm1, %v461_v58  ;;  %2472 = vmatprep.mubr.msk.f32.mxu0 %vm2933_vm0, %v2932_v2 }
 0x30e   :  { %2475 = vmatprep.subr.mxu0 %v2932_v2 }
 0x310   :  { %2473 = vmatmul.mubr.msk.f32.vlgmr.msra.gmra.mrb[8].mxu0 %vm296_vm1, %v459_v60 }
 0x311   :  { %2477 = vmatprep.mubr.msk.f32.mxu0 %vm2933_vm0, %v2932_v2 }
 0x3df   :  { %v3168_v61 = vpop.f32.mrb[6].mxu0 }
 0x3e0   :  { %v2469_v62 = vpop.f32.mrb[7].mxu0 }
 0x3e3   :  { %v532_v63 = vpop.f32.mrb[8].mxu0 }
 0x3e4   :  { %v533_v0 = vadd.f32 %v532_v63, %v3145_v40  ;;  %v2474_v1 = vpop.f32.mrb[9].mxu0 }
 0x3e6   :  { %v536_v3 = vsel %vm373_vm2, %v533_v0, -inf }
 0x3e7   :  { %537 = vmax.xlane.f32.xlu0 %v536_v3 }
 0x3fd   :  { %548 = vrot.lane.b32.xlu0 %v3153_v55, %s2934_s0 }
 0x401   :  { %626 = vrot.lane.b32.xlu0 %v3094_v28, %s2935_s2 }
 0x405   :  { %624 = vrot.lane.b32.xlu0 %v3101_v29, %s2935_s2 }
 0x409   :  { %791 = vrot.lane.b32.xlu0 %v3094_v28, %s2936_s3 }
 0x40d   :  { %1150 = vrot.lane.b32.xlu0 %v218_v4, %s2934_s0 }
 0x411   :  { %1148 = vrot.lane.b32.xlu0 %v216_v5, %s2934_s0 }
 0x415   :  { %1316 = vrot.lane.b32.xlu0 %v218_v4, %s2935_s2 }
 0x419   :  { %1314 = vrot.lane.b32.xlu0 %v216_v5, %s2935_s2 }
 0x41d   :  { %1479 = vrot.lane.b32.xlu0 %v216_v5, %s2936_s3 }
 0x474   :  { %v538_v6 = vpop.xlane.xlu0 %537 }
 0x475   :  { %v539_v7 = vsub.f32 %v533_v0, %v538_v6 }
 0x477   :  { %v540_v8 = vmul.f32 1.442695, %v539_v7 }
 0x478   :  { %v549_v10 = vpop.permute.xlu0 %548 }
 0x479   :  { %2868 = vpow2.f32 %v540_v8  ;;  %2476 = vmatpush3.msra.mxu0 %v549_v10 }
 0x47a   :  { %2480 = vmatprep.subr.mxu0 %v2932_v2 }
 0x47c   :  { %v627_v11 = vpop.permute.xlu0 %626 }
 0x480   :  { %v625_v12 = vpop.permute.xlu0 %624 }
 0x483   :  { %v2869_v13 = vpop.eup %2868 }
 0x484   :  { %v792_v14 = vpop.permute.xlu0 %791  ;;  %v542_v15 = vsel %vm373_vm2, %v2869_v13, 0.0 }
 0x485   :  { %543 = vadd.xlane.f32.xlu1 %v542_v15  ;;  %2491 = vmatpush3.xpose.msk.msra.mxu1 %vm296_vm1, %v792_v14 }
 0x486   :  { %2500 = vmatprep.subr.mxu1 %v2932_v2 }
 0x488   :  { %v1151_v16 = vpop.permute.xlu0 %1150 }
 0x48c   :  { %v1149_v19 = vpop.permute.xlu0 %1148 }
 0x490   :  { %v1317_v24 = vpop.permute.xlu0 %1316 }
 0x494   :  { %v1315_v27 = vpop.permute.xlu0 %1314 }
 0x496   :  { %789 = vrot.lane.b32.xlu1 %v3101_v29, %s2936_s3 }
 0x498   :  { %v1480_v29 = vpop.permute.xlu0 %1479 }
 0x49a   :  { %1481 = vrot.lane.b32.xlu1 %v218_v4, %s2936_s3 }
 0x512   :  { %v544_v17 = vpop.xlane.xlu1 %543 }
 0x513   :  { %2870 = vrcp.f32 %v544_v17 }
 0x516   :  { %v790_v22 = vpop.permute.xlu1 %789 }
 0x517   :  { %2493 = vmatmul.mubr.msk.f32.vlgmr.msra.gmra.mrb[2].mxu1 %vm296_vm1, %v790_v22 }
 0x518   :  { %2501 = vmatpush3.xpose.msk.msra.mxu1 %vm296_vm1, %v218_v4  ;;  %2502 = vmatprep.mubr.msk.f32.mxu1 %vm2933_vm0, %v2932_v2 }
 0x519   :  { %2510 = vmatprep.subr.mxu1 %v2932_v2 }
 0x51a   :  { %v1482_v28 = vpop.permute.xlu1 %1481 }
 0x51b   :  { %2503 = vmatmul.mubr.msk.f32.vlgmr.msra.gmra.mrb[4].mxu1 %vm296_vm1, %v216_v5 }
 0x51c   :  { %2511 = vmatpush3.xpose.msk.msra.mxu1 %vm296_vm1, %v1151_v16  ;;  %2512 = vmatprep.mubr.msk.f32.mxu1 %vm2933_vm0, %v2932_v2 }
 0x51d   :  { %v2871_v25 = vpop.eup %2870  ;;  %2520 = vmatprep.subr.mxu1 %v2932_v2 }
 0x51e   :  { %v3206_v26 = vmul.f32 %v2871_v25, %v2869_v13 }
 0x51f   :  { %2513 = vmatmul.mubr.msk.f32.vlgmr.msra.gmra.mrb[6].mxu1 %vm296_vm1, %v1149_v19 }
 0x520   :  { %2521 = vmatpush3.xpose.msk.msra.mxu1 %vm296_vm1, %v1317_v24  ;;  %2478 = vmatmul.mubr.msk.f32.vlgmr.msra.gmra.mrb[10].mxu0 %vm373_vm2, %v3206_v26 }
 0x521   :  { %2481 = vmatpush3.xpose.msk.msra.mxu0 %vm296_vm1, %v627_v11  ;;  %2522 = vmatprep.mubr.msk.f32.mxu1 %vm2933_vm0, %v2932_v2 }
 0x522   :  { %2530 = vmatprep.subr.mxu1 %v2932_v2  ;;  %2482 = vmatprep.mubr.msk.f32.mxu0 %vm2933_vm0, %v2932_v2 }
 0x523   :  { %2523 = vmatmul.mubr.msk.f32.vlgmr.msra.gmra.mrb[8].mxu1 %vm296_vm1, %v1315_v27  ;;  %2485 = vmatprep.subr.mxu0 %v2932_v2 }
 0x524   :  { %2531 = vmatpush3.xpose.msk.msra.mxu1 %vm296_vm1, %v1482_v28  ;;  %2483 = vmatmul.mubr.msk.f32.vlgmr.msra.gmra.mrb[12].mxu0 %vm296_vm1, %v625_v12 }
 0x525   :  { %2532 = vmatprep.mubr.msk.f32.mxu1 %vm2933_vm0, %v2932_v2  ;;  %2487 = vmatprep.mubr.msk.f32.mxu0 %vm2933_vm0, %v2932_v2 }
 0x527   :  { %2533 = vmatmul.mubr.msk.f32.vlgmr.msra.gmra.mrb[10].mxu1 %vm296_vm1, %v1480_v29 }
 0x5ea   :  { %v863_v30 = vpop.f32.mrb[2].mxu1 }
 0x5eb   :  { %v864_v31 = vadd.f32 %v863_v30, %v3145_v40  ;;  %v2494_v32 = vpop.f32.mrb[3].mxu1 }
 0x5ed   :  { %v867_v34 = vsel %vm373_vm2, %v864_v31, -inf }
 0x5ee   :  { %868 = vmax.xlane.f32.xlu0 %v867_v34  ;;  %v1060_v35 = vpop.f32.mrb[4].mxu1 }
 0x5ef   :  { %v1061_v36 = vadd.f32 %v2183_v33, %v1060_v35  ;;  %v2504_v37 = vpop.f32.mrb[5].mxu1 }
 0x5f1   :  { %v1064_v38 = vsel %vm373_vm2, %v1061_v36, -inf }
 0x5f2   :  { %1065 = vmax.xlane.f32.xlu0 %v1064_v38  ;;  %v1222_v39 = vpop.f32.mrb[6].mxu1 }
 0x5f3   :  { %v1223_v41 = vadd.f32 %v2183_v33, %v1222_v39  ;;  %v3233_v42 = vpop.f32.mrb[10].mxu0  ;;  %v2514_v43 = vpop.f32.mrb[7].mxu1 }
 0x5f4   :  { %v2479_v44 = vpop.f32.mrb[11].mxu0 }
 0x5f5   :  { %v1226_v45 = vsel %vm373_vm2, %v1223_v41, -inf }
 0x5f6   :  { %1227 = vmax.xlane.f32.xlu0 %v1226_v45  ;;  %v1388_v46 = vpop.f32.mrb[8].mxu1 }
 0x5f7   :  { %v698_v47 = vpop.f32.mrb[12].mxu0  ;;  %v2524_v48 = vpop.f32.mrb[9].mxu1  ;;  %v1389_v51 = vadd.f32 %v2183_v33, %v1388_v46 }
 0x5f8   :  { %v699_v49 = vadd.f32 %v698_v47, %v3145_v40  ;;  %v2484_v50 = vpop.f32.mrb[13].mxu0 }
 0x5f9   :  { %v1392_v60 = vsel %vm373_vm2, %v1389_v51, -inf }
 0x5fa   :  { %v1553_v52 = vpop.f32.mrb[10].mxu1  ;;  %v702_v53 = vsel %vm373_vm2, %v699_v49, -inf }
 0x5fb   :  { %v1554_v56 = vadd.f32 %v2183_v33, %v1553_v52  ;;  %v2534_v57 = vpop.f32.mrb[11].mxu1  ;;  %703 = vmax.xlane.f32.xlu1 %v702_v53 }
 0x5fd   :  { %v1557_v58 = vsel %vm373_vm2, %v1554_v56, -inf }
 0x5fe   :  { %1558 = vmax.xlane.f32.xlu0 %v1557_v58 }
 0x5ff   :  { %1393 = vmax.xlane.f32.xlu1 %v1392_v60  ;;  %v2202_v60 = vld [vmem:[%s3491_s4] sm:$0xff]  }
 0x600   :  { %2640 = vmatprep.subr.bf16.mxu1 %v2202_v60 }
 0x601   :  { %2642 = vmatpush3.bf16.msra.mxu1 %v2202_v60 }
 0x67b   :  { %v869_v62 = vpop.xlane.xlu0 %868 }
 0x67c   :  { %v870_v63 = vsub.f32 %v864_v31, %v869_v62  ;;  %v2297_v62 = vld [vmem:[%s3491_s4 + $0x8] sm:$0xff]  }
 0x67d   :  { %2644 = vmatprep.subr.bf16.mxu1 %v2297_v62 }
 0x67e   :  { %v871_v0 = vmul.f32 1.442695, %v870_v63  ;;  %v2298_v63 = vld [vmem:[%s3491_s4 + $0x10] sm:$0xff]   ;;  %2646 = vmatpush3.bf16.msra.mxu1 %v2297_v62 }
 0x67f   :  { %v1066_v1 = vpop.xlane.xlu0 %1065  ;;  %2648 = vmatprep.subr.bf16.mxu1 %v2298_v63 }
 0x680   :  { %2872 = vpow2.f32 %v871_v0  ;;  %v1067_v40 = vsub.f32 %v1061_v36, %v1066_v1  ;;  %v2299_v0 = vld [vmem:[%s3491_s4 + $0x18] sm:$0xff]   ;;  %v2300_v1 = vld [vmem:[%s3491_s4 + $0x20] sm:$0xff]  }
 0x682   :  { %v1068_v3 = vmul.f32 1.442695, %v1067_v40  ;;  %2650 = vmatpush3.bf16.msra.mxu1 %v2298_v63 }
 0x683   :  { %v1228_v4 = vpop.xlane.xlu0 %1227  ;;  %2652 = vmatprep.subr.bf16.mxu1 %v2299_v0 }
 0x684   :  { %2874 = vpow2.f32 %v1068_v3  ;;  %v1229_v5 = vsub.f32 %v1223_v41, %v1228_v4  ;;  %v2301_v4 = vld [vmem:[%s3491_s4 + $0x28] sm:$0xff]  }
 0x686   :  { %v1230_v6 = vmul.f32 1.442695, %v1229_v5  ;;  %2654 = vmatpush3.bf16.msra.mxu1 %v2299_v0  ;;  %v2849_v0 = vld [vmem:[%s3495_s8 + $0x34] ss:$8 sps:$4 sm:$0xff]  }
 0x687   :  { %2656 = vmatprep.subr.bf16.mxu1 %v2300_v1 }
 0x688   :  { %2876 = vpow2.f32 %v1230_v6  ;;  %v704_v7 = vpop.xlane.xlu1 %703 }
 0x689   :  { %v705_v10 = vsub.f32 %v699_v49, %v704_v7  ;;  %v2302_v7 = vld [vmem:[%s3491_s4 + $0x30] sm:$0xff]  }
 0x68a   :  { %v2873_v8 = vpop.eup %2872  ;;  %2658 = vmatpush3.bf16.msra.mxu1 %v2300_v1  ;;  %v2851_v1 = vld [vmem:[%s3495_s8 + $0x30] ss:$8 sps:$4 sm:$0xff]  }
 0x68b   :  { %v1559_v11 = vpop.xlane.xlu0 %1558  ;;  %v873_v12 = vsel %vm373_vm2, %v2873_v8, 0.0  ;;  %v706_v19 = vmul.f32 1.442695, %v705_v10  ;;  %2660 = vmatprep.subr.bf16.mxu1 %v2301_v4 }
 0x68c   :  { %v1560_v13 = vsub.f32 %v1554_v56, %v1559_v11  ;;  %874 = vadd.xlane.f32.xlu0 %v873_v12  ;;  %v1394_v14 = vpop.xlane.xlu1 %1393  ;;  %v2303_v11 = vld [vmem:[%s3491_s4 + $0x38] sm:$0xff]  }
 0x68d   :  { %v1395_v15 = vsub.f32 %v1389_v51, %v1394_v14 }
 0x68e   :  { %v2875_v16 = vpop.eup %2874  ;;  %v1561_v17 = vmul.f32 1.442695, %v1560_v13  ;;  %2662 = vmatpush3.bf16.msra.mxu1 %v2301_v4  ;;  %v2855_v4 = vld [vmem:[%s3495_s8 + $0x54] ss:$8 sps:$4 sm:$0xff]  }
 0x68f   :  { %v1396_v22 = vmul.f32 1.442695, %v1395_v15  ;;  %v1070_v24 = vsel %vm373_vm2, %v2875_v16, 0.0  ;;  %2664 = vmatprep.subr.bf16.mxu1 %v2302_v7 }
 0x690   :  { %2878 = vpow2.f32 %v1561_v17  ;;  %1071 = vadd.xlane.f32.xlu1 %v1070_v24 }
 0x691   :  { %2880 = vpow2.f32 %v1396_v22 }
 0x692   :  { %v2877_v25 = vpop.eup %2876  ;;  %2882 = vpow2.f32 %v706_v19  ;;  %2666 = vmatpush3.bf16.msra.mxu1 %v2302_v7  ;;  %v2860_v7 = vld [vmem:[%s3495_s8 + $0x60] ss:$8 sps:$4 sm:$0xff]  }
 0x693   :  { %v1232_v27 = vsel %vm373_vm2, %v2877_v25, 0.0  ;;  %2668 = vmatprep.subr.bf16.mxu1 %v2303_v11 }
 0x694   :  { %1233 = vadd.xlane.f32.xlu0 %v1232_v27 }
 0x696   :  { %2670 = vmatpush3.bf16.msra.mxu1 %v2303_v11  ;;  %v2234_v11 = vld [vmem:[%s3497_s10] sm:$0xff]  }
 0x69a   :  { %v3243_v28 = vpop.eup %2878 }
 0x69b   :  { %v2881_v29 = vpop.eup %2880  ;;  %v1563_v30 = vsel %vm373_vm2, %v3243_v28, 0.0 }
 0x69c   :  { %1564 = vadd.xlane.f32.xlu0 %v1563_v30  ;;  %v1398_v31 = vsel %vm373_vm2, %v2881_v29, 0.0  ;;  %v2883_v32 = vpop.eup %2882 }
 0x69d   :  { %1399 = vadd.xlane.f32.xlu1 %v1398_v31  ;;  %v708_v33 = vsel %vm373_vm2, %v2883_v32, 0.0 }
 0x6a1   :  { %709 = vadd.xlane.f32.xlu1 %v708_v33 }
 0x6b2   :  { %878 = vrot.lane.b32.xlu0 %v3153_v55, %s2936_s3  ;;  %713 = vrot.lane.b32.xlu1 %v3153_v55, %s2935_s2 }
 0x6b6   :  { %1238 = vrot.lane.b32.xlu1 %v3151_v54, %s2934_s0 }
 0x6ba   :  { %1403 = vrot.lane.b32.xlu1 %v3151_v54, %s2935_s2 }
 0x6be   :  { %1568 = vrot.lane.b32.xlu1 %v3151_v54, %s2936_s3 }
 0x719   :  { %v875_v36 = vpop.xlane.xlu0 %874 }
 0x71d   :  { %v1072_v34 = vpop.xlane.xlu1 %1071 }
 0x721   :  { %v1234_v38 = vpop.xlane.xlu0 %1233 }
 0x729   :  { %v1565_v55 = vpop.xlane.xlu0 %1564 }
 0x72a   :  { %v1400_v35 = vpop.xlane.xlu1 %1399 }
 0x72d   :  { %v879_v45 = vpop.permute.xlu0 %878 }
 0x72e   :  { %v710_v37 = vpop.xlane.xlu1 %709 }
 0x72f   :  { %2884 = vrcp.f32 %v710_v37 }
 0x730   :  { %2886 = vrcp.f32 %v875_v36 }
 0x731   :  { %2888 = vrcp.f32 %v1072_v34 }
 0x732   :  { %v714_v39 = vpop.permute.xlu1 %713  ;;  %2890 = vrcp.f32 %v1234_v38 }
 0x733   :  { %2486 = vmatpush3.msra.mxu0 %v714_v39  ;;  %2892 = vrcp.f32 %v1400_v35 }
 0x734   :  { %2495 = vmatprep.subr.mxu0 %v2932_v2  ;;  %2894 = vrcp.f32 %v1565_v55  ;;  %v2197_v55 = vld [vmem:[%s3492_s5] ss:$0 sm:$0xff]  ;;  %s2939_s5 = smov 16  }
 0x736   :  { %v1239_v48 = vpop.permute.xlu1 %1238 }
 0x739   :  { %v2885_v41 = vpop.eup %2884 }
 0x73a   :  { %v3260_v43 = vmul.f32 %v2885_v41, %v2883_v32  ;;  %v2887_v44 = vpop.eup %2886  ;;  %v1404_v52 = vpop.permute.xlu1 %1403 }
 0x73b   :  { %v3266_v46 = vmul.f32 %v2887_v44, %v2873_v8  ;;  %v2889_v47 = vpop.eup %2888 }
 0x73c   :  { %2488 = vmatmul.mubr.msk.f32.vlgmr.msra.gmra.mrb[14].mxu0 %vm373_vm2, %v3260_v43  ;;  %v3274_v49 = vmul.f32 %v2889_v47, %v2875_v16  ;;  %v2891_v50 = vpop.eup %2890 }
 0x73d   :  { %2496 = vmatpush3.msra.mxu0 %v879_v45  ;;  %2497 = vmatprep.mubr.msk.f32.mxu0 %vm2933_vm0, %v2932_v2  ;;  %v3281_v51 = vmul.f32 %v2891_v50, %v2877_v25 }
 0x73e   :  { %2505 = vmatprep.subr.mxu0 %v2932_v2  ;;  %v1569_v57 = vpop.permute.xlu1 %1568 }
 0x740   :  { %2498 = vmatmul.mubr.msk.f32.vlgmr.msra.gmra.mrb[16].mxu0 %vm373_vm2, %v3266_v46 }
 0x741   :  { %2506 = vmatpush3.msra.mxu0 %v3151_v54  ;;  %2507 = vmatprep.mubr.msk.f32.mxu0 %vm2933_vm0, %v2932_v2  ;;  %v2893_v54 = vpop.eup %2892 }
 0x742   :  { %2515 = vmatprep.subr.mxu0 %v2932_v2  ;;  %v3288_v53 = vmul.f32 %v2893_v54, %v2881_v29  ;;  %v2895_v56 = vpop.eup %2894 }
 0x743   :  { %v3296_v58 = vmul.f32 %v2895_v56, %v3243_v28 }
 0x744   :  { %2508 = vmatmul.mubr.msk.f32.vlgmr.msra.gmra.mrb[18].mxu0 %vm373_vm2, %v3274_v49 }
 0x745   :  { %2516 = vmatpush3.msra.mxu0 %v1239_v48  ;;  %2517 = vmatprep.mubr.msk.f32.mxu0 %vm2933_vm0, %v2932_v2 }
 0x746   :  { %2525 = vmatprep.subr.mxu0 %v2932_v2 }
 0x748   :  { %2518 = vmatmul.mubr.msk.f32.vlgmr.msra.gmra.mrb[20].mxu0 %vm373_vm2, %v3281_v51 }
 0x749   :  { %2526 = vmatpush3.msra.mxu0 %v1404_v52  ;;  %2527 = vmatprep.mubr.msk.f32.mxu0 %vm2933_vm0, %v2932_v2 }
 0x74a   :  { %2535 = vmatprep.subr.mxu0 %v2932_v2 }
 0x74c   :  { %2528 = vmatmul.mubr.msk.f32.vlgmr.msra.gmra.mrb[22].mxu0 %vm373_vm2, %v3288_v53 }
 0x74d   :  { %2536 = vmatpush3.msra.mxu0 %v1569_v57  ;;  %2537 = vmatprep.mubr.msk.f32.mxu0 %vm2933_vm0, %v2932_v2 }
 0x750   :  { %2538 = vmatmul.mubr.msk.f32.vlgmr.msra.gmra.mrb[24].mxu0 %vm373_vm2, %v3296_v58 }
 0x751   :  { %1954 = vmatprep.mubr.f32.mxu0 %v2932_v2 }
 0x80f   :  { %v785_v40 = vpop.f32.mrb[14].mxu0 }
 0x810   :  { %v2489_v3 = vpop.f32.mrb[15].mxu0 }
 0x811   :  { %v2854_v3 = vld [vmem:[%s3495_s8 + $0x40] ss:$8 sps:$4 sm:$0xff]  }
 0x813   :  { %v950_v5 = vpop.f32.mrb[16].mxu0 }
 0x814   :  { %v2499_v6 = vpop.f32.mrb[17].mxu0 }
 0x815   :  { %v2858_v6 = vld [vmem:[%s3495_s8 + $0x64] ss:$8 sps:$4 sm:$0xff]  }
 0x817   :  { %v1144_v8 = vpop.f32.mrb[18].mxu0 }
 0x818   :  { %v2509_v10 = vpop.f32.mrb[19].mxu0 }
 0x819   :  { %v2863_v10 = vld [vmem:[%s3495_s8 + $0x70] ss:$8 sps:$4 sm:$0xff]  }
 0x81b   :  { %v1310_v12 = vpop.f32.mrb[20].mxu0 }
 0x81c   :  { %v2793_v13 = vpack.i.bf16 %v1310_v12, %v3233_v42  ;;  %v2519_v14 = vpop.f32.mrb[21].mxu0 }
 0x81e   :  { %2794 = vrot.lane.b32.xlu0 %v2793_v13, %s2936_s3  ;;  %s2938_s3 = smov 24  }
 0x81f   :  { %v1475_v15 = vpop.f32.mrb[22].mxu0 }
 0x820   :  { %v2798_v16 = vpack.i.bf16 %v1475_v15, %v785_v40  ;;  %v2529_v17 = vpop.f32.mrb[23].mxu0  ;;  %v2852_v40 = vld [vmem:[%s3495_s8 + $0x44] ss:$8 sps:$4 sm:$0xff]  }
 0x822   :  { %2799 = vrot.lane.b32.xlu1 %v2798_v16, %s2935_s2  ;;  %s2937_s2 = smov 8  }
 0x823   :  { %v1640_v19 = vpop.f32.mrb[24].mxu0 }
 0x824   :  { %v2803_v22 = vpack.i.bf16 %v1640_v19, %v950_v5  ;;  %v2539_v24 = vpop.f32.mrb[25].mxu0  ;;  %v2857_v5 = vld [vmem:[%s3495_s8 + $0x50] ss:$8 sps:$4 sm:$0xff]  }
 0x826   :  { %2804 = vrot.lane.b32.xlu0 %v2803_v22, %s2934_s0 }
 0x890   :  { %v2795_v25 = vpop.permute.xlu0 %2794 }
 0x891   :  { %v2797_v28 = vunpack.i.h.bf16 %v2795_v25  ;;  %v2796_v29 = vunpack.i.l.bf16 %v2795_v25 }
 0x893   :  { %v1670_v32 = vsel %vm296_vm1, %v1144_v8, %v2797_v28  ;;  %v981_v35 = vsel %vm296_vm1, %v3168_v61, %v2796_v29  ;;  %v2843_v61 = vld [vmem:[%s3495_s8 + $0x14] ss:$8 sps:$4 sm:$0xff]  }
 0x894   :  { %v2800_v27 = vpop.permute.xlu1 %2799  ;;  %v2861_v8 = vld [vmem:[%s3495_s8 + $0x74] ss:$8 sps:$4 sm:$0xff]  }
 0x895   :  { %v2802_v30 = vunpack.i.h.bf16 %v2800_v27  ;;  %v2801_v31 = vunpack.i.l.bf16 %v2800_v27 }
 0x897   :  { %v983_v36 = vsel %vm982_vm3, %v981_v35, %v2801_v31  ;;  %v1671_v37 = vsel %vm982_vm3, %v1670_v32, %v2802_v30 }
 0x898   :  { %v2805_v42 = vpop.permute.xlu0 %2804 }
 0x899   :  { %v2807_v33 = vunpack.i.h.bf16 %v2805_v42  ;;  %v2806_v34 = vunpack.i.l.bf16 %v2805_v42 }
 0x89b   :  { %v985_v38 = vsel %vm984_vm4, %v983_v36, %v2806_v34  ;;  %v1672_v39 = vsel %vm984_vm4, %v1671_v37, %v2807_v33  ;;  %v2198_v33 = vld [vmem:[%s3493_s6] ss:$0 sm:$0xff] }
 0x89c   :  { %2572 = vmatprep.mubr.f32.mxu1 %v985_v38 }
 0x89d   :  { %2573 = vmatmul.mubr.f32.vlgmr.msra.gmra.mrb[12].mxu1 %v1672_v39 }
 0x970   :  { %v2574_v41 = vpop.f32.mrb[12].mxu1 }
 0x971   :  { %v1784_v44 = vadd.f32 %v2574_v41, %v2197_v55  ;;  %v1778_v45 = vpop.f32.mrb[13].mxu1  ;;  %v2312_v41 = vld [vmem:[%s3497_s10 + $0x48] sm:$0xff]  }
 0x972   :  { %v1779_v47 = vadd.f32 %v2197_v55, %v1778_v45  ;;  %v2313_v45 = vld [vmem:[%s3497_s10 + $0x50] sm:$0xff]  }
 0x973   :  { %v1788_v48 = vadd.f32 %v1784_v44, %v3073_v18  ;;  %v2842_v18 = vld [vmem:[%s3495_s8] ss:$8 sps:$4 sm:$0xff]  }
 0x974   :  { %v1787_v50 = vadd.f32 %v1779_v47, %v3040_v9  ;;  %v2840_v9 = vld [vmem:[%s3495_s8 + $0x4] ss:$8 sps:$4 sm:$0xff]   ;;  %v2314_v47 = vld [vmem:[%s3497_s10 + $0x58] sm:$0xff]  }
 0x975   :  { %1791 = vadd.xlane.f32.xlu0 %v1788_v48  ;;  %2672 = vmatprep.subr.bf16.mxu0 %v2840_v9  ;;  %v2304_v44 = vld [vmem:[%s3497_s10 + $0x8] sm:$0xff]   ;;  %v2307_v9 = vld [vmem:[%s3497_s10 + $0x20] sm:$0xff]  }
 0x976   :  { %1789 = vadd.xlane.f32.xlu1 %v1787_v50  ;;  %2674 = vmatpush1.bf16.msra.mxu0 %v2842_v18  ;;  %v2316_v18 = vld [vmem:[%s3497_s10 + $0x68] sm:$0xff]  }
 0x977   :  { %2676 = vmatprep.subr.bf16.mxu0 %v2843_v61  ;;  %v2308_v61 = vld [vmem:[%s3497_s10 + $0x28] sm:$0xff]  }
 0x987   :  { %954 = vrot.lane.b32.xlu1 %v3206_v26, %s2937_s2  ;;  %v2845_v26 = vld [vmem:[%s3495_s8 + $0x10] ss:$8 sps:$4 sm:$0xff]  }
 0x988   :  { %2678 = vmatpush1.bf16.msra.mxu0 %v2845_v26  ;;  %v2317_v26 = vld [vmem:[%s3497_s10 + $0x70] sm:$0xff]  }
 0x98b   :  { %960 = vrot.lane.b32.xlu1 %v3266_v46, %s2938_s3  ;;  %v2846_v46 = vld [vmem:[%s3495_s8 + $0x24] ss:$8 sps:$4 sm:$0xff]  }
 0x98c   :  { %2680 = vmatprep.subr.bf16.mxu0 %v2846_v46  ;;  %v2309_v46 = vld [vmem:[%s3497_s10 + $0x30] sm:$0xff]  }
 0x98f   :  { %1644 = vrot.lane.b32.xlu1 %v3281_v51, %s2937_s2  ;;  %v2848_v51 = vld [vmem:[%s3495_s8 + $0x20] ss:$8 sps:$4 sm:$0xff]  }
 0x990   :  { %2682 = vmatpush1.bf16.msra.mxu0 %v2848_v51  ;;  %v2318_v51 = vld [vmem:[%s3497_s10 + $0x78] sm:$0xff]  }
 0x991   :  { %2684 = vmatprep.subr.bf16.mxu0 %v2849_v0 }
 0x993   :  { %1647 = vrot.lane.b32.xlu1 %v3288_v53, %s2939_s5 }
 0x994   :  { %2686 = vmatpush1.bf16.msra.mxu0 %v2851_v1 }
 0x995   :  { %2688 = vmatprep.subr.bf16.mxu0 %v2852_v40 }
 0x998   :  { %2690 = vmatpush1.bf16.msra.mxu0 %v2854_v3 }
 0x999   :  { %2692 = vmatprep.subr.bf16.mxu0 %v2855_v4 }
 0x99c   :  { %2694 = vmatpush1.bf16.msra.mxu0 %v2857_v5 }
 0x99d   :  { %2696 = vmatprep.subr.bf16.mxu0 %v2858_v6 }
 0x9a0   :  { %2698 = vmatpush1.bf16.msra.mxu0 %v2860_v7 }
 0x9a1   :  { %2700 = vmatprep.subr.bf16.mxu0 %v2861_v8 }
 0x9a4   :  { %2702 = vmatpush1.bf16.msra.mxu0 %v2863_v10 }
 0xa02   :  { %v1792_v52 = vpop.xlane.xlu0 %1791 }
 0xa03   :  { %v1790_v54 = vpop.xlane.xlu1 %1789  ;;  %v1795_v53 = vmul.f32 0.0078125, %v1792_v52  ;;  %v2310_v52 = vld [vmem:[%s3497_s10 + $0x38] sm:$0xff]  }
 0xa04   :  { %v1794_v56 = vmul.f32 0.0078125, %v1790_v54  ;;  %v1878_v54 = vld [vmem:[%s3496_s9] sm:$0x3] }
 0xa05   :  { %v1797_v60 = vsub.f32 %v1788_v48, %v1795_v53  ;;  %v2306_v48 = vld [vmem:[%s3497_s10 + $0x18] sm:$0xff]   ;;  %v1883_v53 = vrot.slane %v1878_v54, %v130_v23 }
 0xa06   :  { %v1796_v57 = vsub.f32 %v1787_v50, %v1794_v56  ;;  %v2315_v50 = vld [vmem:[%s3497_s10 + $0x60] sm:$0xff]   ;;  %v1887_v56 = vrot.slane %v1878_v54, %v134_v21 }
 0xa07   :  { %v1799_v63 = vmul.f32 %v1797_v60, %v1797_v60  ;;  %v955_v12 = vpop.permute.xlu1 %954 }
 0xa08   :  { %v1798_v62 = vmul.f32 %v1796_v57, %v1796_v57  ;;  %v963_v24 = vsel %vm373_vm2, %v3157_v59, %v955_v12 }
 0xa0a   :  { %1800 = vadd.xlane.f32.xlu0 %v1798_v62 }
 0xa0b   :  { %v961_v13 = vpop.permute.xlu1 %960 }
 0xa0e   :  { %1802 = vadd.xlane.f32.xlu0 %v1799_v63 }
 0xa0f   :  { %v1645_v16 = vpop.permute.xlu1 %1644 }
 0xa10   :  { %v1653_v30 = vsel %vm373_vm2, %v3274_v49, %v1645_v16  ;;  %v2199_v49 = vld [vmem:[%s3494_s7] ss:$0 sm:$0xff]  ;;  %s2940_s7 = smov [#allocation2]  }
 0xa11   :  { %s2156_s14 = sshll.u32 %s2940_s7, 4  ;;  %s2157_s14 = int_to_ptr.vmem [resolvable:$true] %s2156_s14 }
 0xa12   :  { %s2908_s15 = scalar_lea.vmem %s2157_s14, 256  ;;  %p2913_p1 = scmp.lt.s32.totalorder %s2157_s14, %s2157_s14 }
 0xa13   :  { %v1648_v27 = vpop.permute.xlu1 %1647  ;;  %p2909_p0 = scmp.ne.s32.totalorder %s2157_s14, %s2908_s15  ;;  %p2914_p2 = scmp.lt.s32.totalorder %s2908_s15, %s2908_s15 }
 0xa14   :  { %v1654_v31 = vsel %vm964_vm6, %v1653_v30, %v1648_v27 }
 0xa15   :  { %p2915_p3 = por %p2914_p2, %p2913_p1 }
 0xa17   :  { %p2916_p4 = pnand %p2915_p3, %p2909_p0 }
 0xa24   :  { %957 = vrot.lane.b32.xlu0 %v3260_v43, %s2939_s5  ;;  %v2311_v43 = vld [vmem:[%s3497_s10 + $0x40] sm:$0xff]  }
 0xa25   :  { %2704 = vmatprep.subr.bf16.mxu1 %v2311_v43 }
 0xa26   :  { %2706 = vmatpush3.bf16.msra.mxu1 %v2234_v11 }
 0xa27   :  { %2708 = vmatprep.subr.bf16.mxu1 %v2312_v41 }
 0xa28   :  { %1650 = vrot.lane.b32.xlu0 %v3296_v58, %s2938_s3 }
 0xa2a   :  { %2710 = vmatpush3.bf16.msra.mxu1 %v2304_v44 }
 0xa2b   :  { %2712 = vmatprep.subr.bf16.mxu1 %v2313_v45 }
 0xa97   :  { %v1801_v14 = vpop.xlane.xlu0 %1800 }
 0xa98   :  { %v1804_v15 = vmul.f32 0.0078125, %v1801_v14 }
 0xa9a   :  { %v1806_v17 = vadd.f32 1e-05, %v1804_v15 }
 0xa9b   :  { %v1803_v19 = vpop.xlane.xlu0 %1802 }
 0xa9c   :  { %2896 = vrsqrt.f32 %v1806_v17  ;;  %v1805_v58 = vmul.f32 0.0078125, %v1803_v19 }
 0xa9e   :  { %v1807_v22 = vadd.f32 1e-05, %v1805_v58 }
 0xa9f   :  { %v958_v25 = vpop.permute.xlu0 %957 }
 0xaa0   :  { %2898 = vrsqrt.f32 %v1807_v22  ;;  %v965_v28 = vsel %vm964_vm6, %v963_v24, %v958_v25 }
 0xaa1   :  { %v967_v29 = vsel %vm966_vm5, %v965_v28, %v961_v13 }
 0xaa2   :  { %968 = vst.msk [vmem:[%s3500_s13] sm:$0xff] %vm296_vm1, %v967_v29 }
 0xaa3   :  { %v1651_v42 = vpop.permute.xlu0 %1650 }
 0xaa4   :  { %v1655_v32 = vsel %vm966_vm5, %v1654_v31, %v1651_v42 }
 0xaa5   :  { %2196 = vst.msk [vmem:[%s3500_s13 + $0x8] sm:$0xff] %vm296_vm1, %v1655_v32 }
 0xaa6   :  { %v2897_v59 = vpop.eup %2896 }
 0xaa7   :  { %v1810_v34 = vmul.f32 %v2897_v59, %v1796_v57 }
 0xaa9   :  { %v1819_v35 = vmul.f32 %v2198_v33, %v1810_v34 }
 0xaaa   :  { %v2899_v36 = vpop.eup %2898 }
 0xaab   :  { %v1828_v37 = vadd.f32 %v2199_v49, %v1819_v35  ;;  %v1811_v38 = vmul.f32 %v2899_v36, %v1797_v60 }
 0xaad   :  { %1955 = vmatmul.mubr.f32.vlgmr.msra.gmra.mrb[26].mxu0 %v1828_v37  ;;  %v1820_v39 = vmul.f32 %v2198_v33, %v1811_v38 }
 0xaae   :  { %1960 = vmatprep.mubr.f32.mxu0 %v2932_v2  ;;  %v2305_v2 = vld [vmem:[%s3497_s10 + $0x10] sm:$0xff]  }
 0xaaf   :  { %v1829_v55 = vadd.f32 %v2199_v49, %v1820_v39  ;;  %2714 = vmatpush3.bf16.msra.mxu1 %v2305_v2  ;;  %v2200_v39 = vld [vmem:[%s3498_s11] ss:$0 sm:$0xff] }
 0xab0   :  { %2716 = vmatprep.subr.bf16.mxu1 %v2314_v47 }
 0xab1   :  { %1961 = vmatmul.mubr.f32.gmra.mrb[28].mxu0 %v1829_v55 }
 0xab3   :  { %2718 = vmatpush3.bf16.msra.mxu1 %v2306_v48 }
 0xab4   :  { %2720 = vmatprep.subr.bf16.mxu1 %v2315_v50 }
 0xab7   :  { %2722 = vmatpush3.bf16.msra.mxu1 %v2307_v9 }
 0xab8   :  { %2724 = vmatprep.subr.bf16.mxu1 %v2316_v18 }
 0xabb   :  { %2726 = vmatpush3.bf16.msra.mxu1 %v2308_v61 }
 0xabc   :  { %2728 = vmatprep.subr.bf16.mxu1 %v2317_v26 }
 0xabf   :  { %2730 = vmatpush3.bf16.msra.mxu1 %v2309_v46 }
 0xac0   :  { %2732 = vmatprep.subr.bf16.mxu1 %v2318_v51 }
 0xac3   :  { %2734 = vmatpush3.bf16.msra.mxu1 %v2310_v52 }
 0xb80   :  { %v1956_v57 = vpop.f32.mrb[26].mxu0 }
 0xb81   :  { %v1957_v60 = vadd.f32 %v1956_v57, %v1883_v53  ;;  %v1958_v62 = vpop.f32.mrb[27].mxu0 }
 0xb82   :  { %v1959_v63 = vadd.f32 %v1958_v62, %v1887_v56 }
 0xb83   :  { %v1971_v0 = vmul.f32 0.044715, %v1957_v60  ;;  %v1967_v30 = vmul.f32 0.5, %v1957_v60 }
 0xb84   :  { %v1972_v1 = vmul.f32 0.044715, %v1959_v63  ;;  %v1962_v40 = vpop.f32.mrb[28].mxu0  ;;  %v1968_v28 = vmul.f32 0.5, %v1959_v63 }
 0xb85   :  { %v1975_v3 = vmul.f32 %v1971_v0, %v1957_v60  ;;  %v1963_v4 = vadd.f32 %v1962_v40, %v1883_v53  ;;  %v1964_v5 = vpop.f32.mrb[29].mxu0 }
 0xb86   :  { %v1976_v6 = vmul.f32 %v1972_v1, %v1959_v63  ;;  %v1965_v7 = vadd.f32 %v1964_v5, %v1887_v56 }
 0xb87   :  { %v1979_v8 = vmul.f32 %v1975_v3, %v1957_v60  ;;  %v1973_v10 = vmul.f32 0.044715, %v1963_v4  ;;  %v1969_v35 = vmul.f32 0.5, %v1963_v4 }
 0xb88   :  { %v1974_v43 = vmul.f32 0.044715, %v1965_v7  ;;  %v1980_v11 = vmul.f32 %v1976_v6, %v1959_v63  ;;  %v1970_v34 = vmul.f32 0.5, %v1965_v7 }
 0xb89   :  { %v1983_v23 = vadd.f32 %v1979_v8, %v1957_v60  ;;  %v1977_v12 = vmul.f32 %v1973_v10, %v1963_v4 }
 0xb8a   :  { %v1978_v20 = vmul.f32 %v1974_v43, %v1965_v7  ;;  %v1984_v21 = vadd.f32 %v1980_v11, %v1959_v63 }
 0xb8b   :  { %v1987_v13 = vmul.f32 0.7978846, %v1983_v23  ;;  %v1981_v14 = vmul.f32 %v1977_v12, %v1963_v4 }
 0xb8c   :  { %v1988_v15 = vmul.f32 0.7978846, %v1984_v21  ;;  %v1982_v16 = vmul.f32 %v1978_v20, %v1965_v7 }
 0xb8d   :  { %2900 = vtanh.f32 %v1987_v13  ;;  %v1985_v17 = vadd.f32 %v1981_v14, %v1963_v4 }
 0xb8e   :  { %2902 = vtanh.f32 %v1988_v15  ;;  %v1986_v19 = vadd.f32 %v1982_v16, %v1965_v7 }
 0xb8f   :  { %v1989_v58 = vmul.f32 0.7978846, %v1985_v17 }
 0xb90   :  { %v1990_v22 = vmul.f32 0.7978846, %v1986_v19 }
 0xb91   :  { %2904 = vtanh.f32 %v1989_v58 }
 0xb92   :  { %2906 = vtanh.f32 %v1990_v22 }
 0xb97   :  { %v2901_v24 = vpop.eup %2900 }
 0xb98   :  { %v2903_v25 = vpop.eup %2902  ;;  %v1995_v27 = vadd.f32 1.0, %v2901_v24 }
 0xb99   :  { %v1996_v29 = vadd.f32 1.0, %v2903_v25 }
 0xb9a   :  { %v1999_v59 = vmul.f32 %v1995_v27, %v1967_v30 }
 0xb9b   :  { %v2905_v31 = vpop.eup %2904  ;;  %v2000_v42 = vmul.f32 %v1996_v29, %v1968_v28 }
 0xb9c   :  { %v2907_v32 = vpop.eup %2906  ;;  %v1997_v33 = vadd.f32 1.0, %v2905_v31 }
 0xb9d   :  { %2138 = vmatprep.mubr.f32.mxu1 %v2000_v42  ;;  %v1998_v49 = vadd.f32 1.0, %v2907_v32 }
 0xb9e   :  { %2139 = vmatmul.mubr.f32.vlgmr.msra.gmra.mrb[14].mxu1 %v1999_v59  ;;  %v2001_v37 = vmul.f32 %v1997_v33, %v1969_v35 }
 0xb9f   :  { %v2002_v36 = vmul.f32 %v1998_v49, %v1970_v34 }
 0xba1   :  { %2143 = vmatprep.mubr.f32.mxu1 %v2002_v36 }
 0xba2   :  { %2144 = vmatmul.mubr.f32.gmra.mrb[16].mxu1 %v2001_v37 }
 0xc71   :  { %v2419_v38 = vpop.f32.mrb[14].mxu1 }
 0xc72   :  { %v2420_v55 = vpop.f32.mrb[15].mxu1 }
 0xc73   :  { %v2421_v41 = vadd.f32 %v2420_v55, %v2419_v38 }
 0xc75   :  { %v2141_v44 = vadd.f32 %v2421_v41, %v2200_v39  ;;  %v2422_v45 = vpop.f32.mrb[16].mxu1 }
 0xc76   :  { %v2423_v2 = vpop.f32.mrb[17].mxu1 }
 0xc77   :  { %2149 = vst [vmem:[#allocation2] sm:$0xff] %v2141_v44  ;;  %v2424_v47 = vadd.f32 %v2423_v2, %v2422_v45 }
 0xc79   :  { %v2146_v48 = vadd.f32 %v2424_v47, %v2200_v39 }
 0xc7b   :  { %2150 = vst [vmem:[#allocation2 + $0x8] sm:$0xff] %v2146_v48 }
 0xc7c   :  { %2919 = shalt.err (!%p2916_p4)
}
 0xc7d   :  { %s2920_s17 = scalar_lea.hbm %s3499_s12, 256 }
 0xc7e   :  { %p2921_p5 = scmp.ne.s32.totalorder %s3499_s12, %s2920_s17  ;;  %p2924_p6 = scmp.lt.u32.totalorder %s2920_s17, %s3499_s12 }
 0xc80   :  { %p2926_p7 = pnand %p2924_p6, %p2921_p5 }
 0xc82   :  { %2929 = shalt.err (!%p2926_p7)
}
 0xc83   :  { %s2941_s22 = smov 128  }
 0xc84   :  { %2162 = dma.vmem_to_hbm [thread:$0]  %s2157_s14, 256, %s3499_s12, [#allocation3], %s2941_s22, %s2941_s22, %s2937_s2  }
 0xc85   :  { %2930 = dma.done.wait [#allocation3], 256  }
 0xc86   :  { %2931 = vsyncadd [#allocation3], 4294967040 }
 0xc87   :  { %2170 = vsyncpa [#allocation3], 1 }

</bundles_post_ra>
